<compile_context>
chip_gen: v6e
topology: v6e:2x2x1
jax: 0.10.0
libtpu: 0.0.40
codegen_flags: <defaults>
</compile_context>

<pallas_src>
from functools import partial

import jax
import jax.numpy as jnp
from jax.experimental import pallas as pl
from jax.experimental.pallas import tpu as pltpu


def _silu(x):
    return x * jax.nn.sigmoid(x)


def _round_up(x, m):
    return (x + m - 1) // m * m


# ----------------------------------------------------------------------------
# Kernel 1: edge MLP + per-shard segment-sum.
# ----------------------------------------------------------------------------
def _edge_kernel(ps_ref, pt_ref, ids_ref, rad_ref, b1_ref, w2_ref, b2_ref,
                 agg_ref):
    k = pl.program_id(1)                 # edge-tile index inside this shard
    mxu_dtype = w2_ref.dtype
    npa = ps_ref.shape[0]                # padded nodes + 8 (w1r row block)
    n_pad = agg_ref.shape[1]             # padded node count
    f32 = jnp.float32

    @pl.when(k == 0)
    def _init():
        agg_ref[...] = jnp.zeros_like(agg_ref)

    radial = rad_ref[...]                # (1, tE) f32
    row_ids = ids_ref[0:1, :]            # (1, tE) int32
    col_ids = ids_ref[1:2, :]            # (1, tE) int32
    tile_e = radial.shape[1]

    iota = jax.lax.broadcasted_iota(jnp.int32, (npa, tile_e), 0)
    oh_row = iota == row_ids             # (npa, tE) one-hot of source node
    # Source gather matrix: one-hot rows for ps plus radial in row `n_pad`
    # (ps_aug carries W1_radial there) -> gathers ps[row] + radial * w1r.
    gath_src = jnp.where(iota == n_pad, radial, oh_row.astype(f32))
    gath_tgt = (iota == col_ids).astype(f32)

    cdims = (((0,), (0,)), ((), ()))     # contract dim 0 of both operands
    z = (jax.lax.dot_general(gath_src.astype(mxu_dtype), ps_ref[...], cdims,
                             preferred_element_type=f32)
         + jax.lax.dot_general(gath_tgt.astype(mxu_dtype), pt_ref[...], cdims,
                               preferred_element_type=f32)
         + b1_ref[...])
    z = _silu(z)                         # (tE, H) f32 -- edge_mlp layer 1

    e = jnp.dot(z.astype(mxu_dtype), w2_ref[...],
                preferred_element_type=f32) + b2_ref[...]
    e = _silu(e)                         # (tE, H) f32 -- edge_mlp layer 2

    # unsorted_segment_sum over this tile: agg[row[e]] += e[e]  (f32 operands)
    scat = jnp.dot(oh_row[:n_pad, :].astype(f32), e,
                   preferred_element_type=f32)          # (n_pad, H)
    agg_ref[...] += scat[None]           # self.ave == 1 -> no extra scale


# ----------------------------------------------------------------------------
# Kernel 2: combine shard partials + node MLP + residual.
# ----------------------------------------------------------------------------
def _node_kernel(h_ref, agg_ref, w3h_ref, w3a_ref, b3_ref, w4_ref, b4_ref,
                 out_ref):
    mxu_dtype = w4_ref.dtype
    f32 = jnp.float32
    agg = jnp.sum(agg_ref[...], axis=0)  # combine per-shard partial sums
    h = h_ref[...]
    n1 = _silu(jnp.dot(h.astype(mxu_dtype), w3h_ref[...],
                       preferred_element_type=f32)
               + jnp.dot(agg.astype(mxu_dtype), w3a_ref[...],
                         preferred_element_type=f32)
               + b3_ref[...])
    out = jnp.dot(n1.astype(mxu_dtype), w4_ref[...],
                  preferred_element_type=f32) + b4_ref[...]
    out_ref[...] = h + out               # residual=True


def _device_defaults():
    kind = ""
    try:
        kind = jax.devices()[0].device_kind.lower()
    except Exception:
        pass
    if "v7" in kind:
        # 64 MiB VMEM per TC, 2 TensorCores -> shard edges across cores.
        return dict(tile_e=512, n_shards=2, vmem_limit_bytes=48 * 1024 * 1024)
    if "v5" in kind or "v6" in kind:
        # 128 MiB VMEM, single TensorCore.
        return dict(tile_e=1024, n_shards=1, vmem_limit_bytes=100 * 1024 * 1024)
    return dict(tile_e=512, n_shards=1, vmem_limit_bytes=32 * 1024 * 1024)


def egcl_encode_forward(h, coord, row, col, params, *,
                        tile_e=None, n_shards=None, vmem_limit_bytes=None,
                        mxu_dtype=jnp.bfloat16, resident_buffers=1):
    """h:(N,nf) f32, coord:(N,3) f32, row/col:(E,) int -> (N,nf) f32."""
    defaults = _device_defaults()
    tile_e = defaults["tile_e"] if tile_e is None else tile_e
    n_shards = defaults["n_shards"] if n_shards is None else n_shards
    vmem_limit_bytes = (defaults["vmem_limit_bytes"]
                        if vmem_limit_bytes is None else vmem_limit_bytes)

    n_nodes, nf = h.shape
    n_edges = row.shape[0]
    hidden = params["b1"].shape[-1]
    out_nf = params["b4"].shape[-1]
    assert out_nf == nf, "residual=True requires output_nf == input_nf"

    f32 = jnp.float32
    hp = _round_up(hidden, 128)          # lane-dense hidden axis
    fp = _round_up(max(nf, out_nf), 128)  # lane-dense node-feature axis

    # node-axis padding / node-kernel tiling
    np_ = _round_up(n_nodes, 8)
    if np_ > 512:
        tile_n = 512
        np_ = _round_up(n_nodes, tile_n)
    else:
        tile_n = np_
    npa = np_ + 8                        # +1 sublane group carrying w1r row

    # edge-axis sharding / tiling (tile_e must be a multiple of 128)
    tile_e = _round_up(max(tile_e, 128), 128)
    per_shard = pl.cdiv(n_edges, n_shards)
    tile_e = min(tile_e, _round_up(per_shard, 128))
    tiles_per_shard = pl.cdiv(per_shard, tile_e)
    ep_shard = tiles_per_shard * tile_e
    ep = n_shards * ep_shard

    # ---- JAX glue: per-node pre-projection + edge metadata -----------------
    ps = h @ params["w1s"]               # (N, H) = h @ W1[:nf]
    pt = h @ params["w1t"]               # (N, H) = h @ W1[nf:2nf]
    ps_aug = (jnp.zeros((npa, hp), mxu_dtype)
              .at[:n_nodes, :hidden].set(ps.astype(mxu_dtype))
              .at[np_, :hidden].set(params["w1r"][0].astype(mxu_dtype)))
    pt_aug = (jnp.zeros((npa, hp), mxu_dtype)
              .at[:n_nodes, :hidden].set(pt.astype(mxu_dtype)))

    cd = coord[row] - coord[col]
    radial = jnp.sum(cd * cd, axis=1)    # (E,)
    rad_p = jnp.zeros((1, ep), f32).at[0, :n_edges].set(radial)

    # Padded edges get id == npa (outside the one-hot iota range) so they
    # gather zeros and scatter nothing.
    ids = jnp.full((2, ep), npa, jnp.int32)
    ids = ids.at[0, :n_edges].set(row.astype(jnp.int32))
    ids = ids.at[1, :n_edges].set(col.astype(jnp.int32))

    def pad2(w, r, c, dtype):
        return jnp.zeros((r, c), dtype).at[:w.shape[0], :w.shape[1]].set(
            w.astype(dtype))

    b1 = pad2(params["b1"], 1, hp, f32)
    w2 = pad2(params["w2"], hp, hp, mxu_dtype)
    b2 = pad2(params["b2"], 1, hp, f32)
    h_p = pad2(h, np_, fp, f32)
    w3h = pad2(params["w3h"], fp, hp, mxu_dtype)
    w3a = pad2(params["w3a"], hp, hp, mxu_dtype)
    b3 = pad2(params["b3"], 1, hp, f32)
    w4 = pad2(params["w4"], hp, fp, mxu_dtype)
    b4 = pad2(params["b4"], 1, fp, f32)

    def resident(shape):
        def idx(*_args):
            return (0,) * len(shape)
        if resident_buffers is None:
            return pl.BlockSpec(shape, idx)
        return pl.BlockSpec(shape, idx,
                            pipeline_mode=pl.Buffered(resident_buffers))

    bpe = jnp.dtype(mxu_dtype).itemsize

    # ---- Kernel 1: edge MLP + per-shard segment sum -------------------------
    edge_cost = pl.CostEstimate(
        flops=int(4 * ep * npa * hp          # two one-hot gathers
                  + 2 * ep * hp * hp         # edge_mlp layer 2
                  + 2 * ep * np_ * hp),      # scatter matmul
        transcendentals=int(2 * ep * hp),
        bytes_accessed=int(ep * 12 + 2 * npa * hp * bpe + hp * hp * bpe
                           + 2 * hp * 4 + n_shards * np_ * hp * 4))

    agg_part = pl.pallas_call(
        _edge_kernel,
        out_shape=jax.ShapeDtypeStruct((n_shards, np_, hp), f32),
        grid=(n_shards, tiles_per_shard),
        in_specs=[
            resident((npa, hp)),                                      # ps_aug
            resident((npa, hp)),                                      # pt_aug
            pl.BlockSpec((2, tile_e),
                         lambda c, k: (0, c * tiles_per_shard + k)),  # ids
            pl.BlockSpec((1, tile_e),
                         lambda c, k: (0, c * tiles_per_shard + k)),  # radial
            resident((1, hp)),                                        # b1
            resident((hp, hp)),                                       # w2
            resident((1, hp)),                                        # b2
        ],
        out_specs=pl.BlockSpec((1, np_, hp), lambda c, k: (c, 0, 0)),
        compiler_params=pltpu.CompilerParams(
            dimension_semantics=("parallel", "arbitrary"),
            vmem_limit_bytes=vmem_limit_bytes),
        cost_estimate=edge_cost,
    )(ps_aug, pt_aug, ids, rad_p, b1, w2, b2)

    # ---- Kernel 2: combine shards + node MLP + residual ---------------------
    node_cost = pl.CostEstimate(
        flops=int(2 * np_ * hp * (2 * fp + hp)),
        transcendentals=int(np_ * hp),
        bytes_accessed=int(2 * np_ * fp * 4 + n_shards * np_ * hp * 4
                           + (fp * hp + hp * hp + hp * fp) * bpe))

    out_p = pl.pallas_call(
        _node_kernel,
        out_shape=jax.ShapeDtypeStruct((np_, fp), f32),
        grid=(np_ // tile_n,),
        in_specs=[
            pl.BlockSpec((tile_n, fp), lambda i: (i, 0)),             # h
            pl.BlockSpec((n_shards, tile_n, hp), lambda i: (0, i, 0)),  # agg
            resident((fp, hp)),                                       # w3h
            resident((hp, hp)),                                       # w3a
            resident((1, hp)),                                        # b3
            resident((hp, fp)),                                       # w4
            resident((1, fp)),                                        # b4
        ],
        out_specs=pl.BlockSpec((tile_n, fp), lambda i: (i, 0)),
        compiler_params=pltpu.CompilerParams(
            dimension_semantics=("parallel",),
            vmem_limit_bytes=vmem_limit_bytes),
        cost_estimate=node_cost,
    )(h_p, agg_part, w3h, w3a, b3, w4, b4)

    return out_p[:n_nodes, :out_nf]


# ----------------------------------------------------------------------------
# Pure-JAX reference + parameters (mirrors the PyTorch module).
# ----------------------------------------------------------------------------
def ref_forward(h, coord, row, col, params):
    cd = coord[row] - coord[col]
    radial = jnp.sum(cd ** 2, axis=1, keepdims=True)
    w1 = jnp.concatenate([params["w1s"], params["w1t"], params["w1r"]], axis=0)
    x = jnp.concatenate([h[row], h[col], radial], axis=1)
    z = jax.nn.silu(x @ w1 + params["b1"])
    e = jax.nn.silu(z @ params["w2"] + params["b2"])
    agg = jnp.zeros((h.shape[0], e.shape[1]), jnp.float32).at[row].add(e)
    w3 = jnp.concatenate([params["w3h"], params["w3a"]], axis=0)
    n = jnp.concatenate([h, agg], axis=1)
    o = jax.nn.silu(n @ w3 + params["b3"]) @ params["w4"] + params["b4"]
    return h + o


def make_params(key, nf, hidden, out_nf):
    ks = jax.random.split(key, 8)
    s = 0.1
    return {
        # edge_mlp Linear(2*nf+1 -> hidden) split into source/target/radial rows
        "w1s": s * jax.random.normal(ks[0], (nf, hidden), jnp.float32),
        "w1t": s * jax.random.normal(ks[1], (nf, hidden), jnp.float32),
        "w1r": s * jax.random.normal(ks[2], (1, hidden), jnp.float32),
        "b1": s * jax.random.normal(ks[3], (1, hidden), jnp.float32),
        # edge_mlp Linear(hidden -> hidden)
        "w2": s * jax.random.normal(ks[4], (hidden, hidden), jnp.float32),
        "b2": s * jax.random.normal(ks[5], (1, hidden), jnp.float32),
        # node_mlp Linear(hidden + nf -> hidden) split into h/agg rows
        "w3h": s * jax.random.normal(ks[6], (nf, hidden), jnp.float32),
        "w3a": s * jax.random.normal(ks[7], (hidden, hidden), jnp.float32),
        "b3": jnp.zeros((1, hidden), jnp.float32),
        # node_mlp Linear(hidden -> out_nf)
        "w4": s * jax.random.normal(jax.random.fold_in(key, 99),
                                    (hidden, out_nf), jnp.float32),
        "b4": jnp.zeros((1, out_nf), jnp.float32),
    }


if __name__ == "__main__":
    key = jax.random.PRNGKey(0)
    k_h, k_c, k_e, k_p = jax.random.split(key, 4)

    n_nodes = 16     # N
    nf = 32          # input_nf == output_nf (residual)
    hidden = 32      # hidden_nf
    n_edges = 300    # E

    h = jax.random.normal(k_h, (n_nodes, nf), jnp.float32)
    coord = jax.random.normal(k_c, (n_nodes, 3), jnp.float32)
    row = jax.random.randint(k_e, (n_edges,), 0, n_nodes, jnp.int32)
    col = jax.random.randint(jax.random.fold_in(k_e, 1), (n_edges,), 0,
                             n_nodes, jnp.int32)
    params = make_params(k_p, nf, hidden, nf)

    ref = ref_forward(h, coord, row, col, params)

    def run(**kw):
        fn = jax.jit(partial(egcl_encode_forward, **kw))
        return jax.block_until_ready(fn(h, coord, row, col, params))

    # Exact-math verification path: f32 MXU operands, small tiles + 2 edge
    # shards so multi-tile accumulation and the shard combine are exercised.
    verify_kw = dict(mxu_dtype=jnp.float32, tile_e=128, n_shards=2)
    resident_buffers = 1
    try:
        out_f32 = run(resident_buffers=resident_buffers, **verify_kw)
    except Exception:
        # pipeline_mode=pl.Buffered(1) unavailable -> default double-buffering.
        resident_buffers = None
        out_f32 = run(resident_buffers=resident_buffers, **verify_kw)
    assert out_f32.shape == (n_nodes, nf)
    assert jnp.allclose(out_f32, ref, atol=1e-4, rtol=1e-4), \
        "f32 kernel mismatch vs reference"

    # Production path: bf16 MXU operands, per-generation default config.
    out_bf16 = run(resident_buffers=resident_buffers, mxu_dtype=jnp.bfloat16)
    assert out_bf16.shape == (n_nodes, nf)
    err = float(jnp.max(jnp.abs(out_bf16 - ref)))
    scale = max(1.0, float(jnp.max(jnp.abs(ref))))
    assert err == err and err <= 5e-2 * scale, \
        f"bf16 kernel error too large: {err} (scale {scale})"

    print("KERNEL_OK")
</pallas_src>

<mosaic_0001>
module attributes {stable_mosaic.version = 11 : i64} {
  func.func @_edge_kernel(%arg0: i32, %arg1: i32, %arg2: memref<24x128xf32, #tpu.memory_space<vmem>>, %arg3: memref<24x128xf32, #tpu.memory_space<vmem>>, %arg4: memref<2x128xi32, #tpu.memory_space<vmem>>, %arg5: memref<1x128xf32, #tpu.memory_space<vmem>>, %arg6: memref<1x128xf32, #tpu.memory_space<vmem>>, %arg7: memref<128x128xf32, #tpu.memory_space<vmem>>, %arg8: memref<1x128xf32, #tpu.memory_space<vmem>>, %arg9: memref<1x16x128xf32, #tpu.memory_space<vmem>>) attributes {dimension_semantics = [#tpu.dimension_semantics<parallel>, #tpu.dimension_semantics<arbitrary>], iteration_bounds = array<i64: 2, 2>, scalar_prefetch = 0 : i64, scratch_operands = 0 : i64, tpu.core_type = #tpu.core_type<tc>, window_params = [{pipeline_mode = #tpu.pipeline_mode<synchronous>, transform_indices = @transform_0, window_bounds = array<i64: 24, 128>}, {pipeline_mode = #tpu.pipeline_mode<synchronous>, transform_indices = @transform_1, window_bounds = array<i64: 24, 128>}, {transform_indices = @transform_2, window_bounds = array<i64: 2, 128>}, {transform_indices = @transform_3, window_bounds = array<i64: 1, 128>}, {pipeline_mode = #tpu.pipeline_mode<synchronous>, transform_indices = @transform_4, window_bounds = array<i64: 1, 128>}, {pipeline_mode = #tpu.pipeline_mode<synchronous>, transform_indices = @transform_5, window_bounds = array<i64: 128, 128>}, {pipeline_mode = #tpu.pipeline_mode<synchronous>, transform_indices = @transform_6, window_bounds = array<i64: 1, 128>}, {transform_indices = @transform_7, window_bounds = array<i64: 1, 16, 128>}]} {
    %c0_i32 = arith.constant 0 : i32
    %0 = arith.cmpi eq, %arg1, %c0_i32 : i32
    %1 = arith.extui %0 : i1 to i32
    %c0_i32_0 = arith.constant 0 : i32
    %2 = arith.cmpi ne, %1, %c0_i32_0 : i32
    scf.if %2 {
      %cst_26 = arith.constant 0.000000e+00 : f32
      %53 = vector.broadcast %cst_26 : f32 to vector<1x16x128xf32>
      %c0_27 = arith.constant 0 : index
      %c0_28 = arith.constant 0 : index
      %c0_29 = arith.constant 0 : index
      %54 = vector.load %arg9[%c0_27, %c0_28, %c0_29] : memref<1x16x128xf32, #tpu.memory_space<vmem>>, vector<1x16x128xf32>
      tpu.vector_store %arg9[%c0_27, %c0_28, %c0_29], %53 {strides = array<i32>} : memref<1x16x128xf32, #tpu.memory_space<vmem>>, vector<1x16x128xf32>,
    } else {
    }
    %c0 = arith.constant 0 : index
    %c0_1 = arith.constant 0 : index
    %3 = vector.load %arg5[%c0, %c0_1] : memref<1x128xf32, #tpu.memory_space<vmem>>, vector<1x128xf32>
    %c0_2 = arith.constant 0 : index
    %c0_3 = arith.constant 0 : index
    %4 = vector.load %arg4[%c0_2, %c0_3] : memref<2x128xi32, #tpu.memory_space<vmem>>, vector<1x128xi32>
    %c1 = arith.constant 1 : index
    %c0_4 = arith.constant 0 : index
    %5 = vector.load %arg4[%c1, %c0_4] : memref<2x128xi32, #tpu.memory_space<vmem>>, vector<1x128xi32>
    %6 = tpu.iota {dimensions = array<i32: 0>} : vector<24x128xi32>
    %7 = vector.broadcast %4 : vector<1x128xi32> to vector<24x128xi32>
    %8 = arith.cmpi eq, %6, %7 : vector<24x128xi32>
    %c16_i32 = arith.constant 16 : i32
    %9 = vector.broadcast %c16_i32 : i32 to vector<24x128xi32>
    %10 = arith.cmpi eq, %6, %9 : vector<24x128xi32>
    %11 = arith.extui %8 : vector<24x128xi1> to vector<24x128xi32>
    %12 = arith.sitofp %11 : vector<24x128xi32> to vector<24x128xf32>
    %13 = vector.shape_cast %3 : vector<1x128xf32> to vector<1x128xf32>
    %14 = vector.broadcast %13 : vector<1x128xf32> to vector<24x128xf32>
    %15 = arith.select %10, %14, %12 : vector<24x128xi1>, vector<24x128xf32>
    %16 = vector.broadcast %5 : vector<1x128xi32> to vector<24x128xi32>
    %17 = arith.cmpi eq, %6, %16 : vector<24x128xi32>
    %18 = arith.extui %17 : vector<24x128xi1> to vector<24x128xi32>
    %19 = arith.sitofp %18 : vector<24x128xi32> to vector<24x128xf32>
    %c0_5 = arith.constant 0 : index
    %c0_6 = arith.constant 0 : index
    %20 = vector.load %arg2[%c0_5, %c0_6] : memref<24x128xf32, #tpu.memory_space<vmem>>, vector<24x128xf32>
    %cst = arith.constant dense<0.000000e+00> : vector<128x128xf32>
    %21 = tpu.matmul %15, %20, %cst {dimension_numbers = #tpu.dot_dimension_numbers<[0], [0], [1], [1], [0, 1, 1, 1], [], []>} : vector<24x128xf32>, vector<24x128xf32>, vector<128x128xf32> -> vector<128x128xf32>
    %c0_7 = arith.constant 0 : index
    %c0_8 = arith.constant 0 : index
    %22 = vector.load %arg3[%c0_7, %c0_8] : memref<24x128xf32, #tpu.memory_space<vmem>>, vector<24x128xf32>
    %cst_9 = arith.constant dense<0.000000e+00> : vector<128x128xf32>
    %23 = tpu.matmul %19, %22, %cst_9 {dimension_numbers = #tpu.dot_dimension_numbers<[0], [0], [1], [1], [0, 1, 1, 1], [], []>} : vector<24x128xf32>, vector<24x128xf32>, vector<128x128xf32> -> vector<128x128xf32>
    %24 = arith.addf %21, %23 : vector<128x128xf32>
    %c0_10 = arith.constant 0 : index
    %c0_11 = arith.constant 0 : index
    %25 = vector.load %arg6[%c0_10, %c0_11] : memref<1x128xf32, #tpu.memory_space<vmem>>, vector<1x128xf32>
    %26 = vector.broadcast %25 : vector<1x128xf32> to vector<128x128xf32>
    %27 = arith.addf %24, %26 : vector<128x128xf32>
    %28 = arith.negf %27 : vector<128x128xf32>
    %29 = math.exp %28 : vector<128x128xf32>
    %cst_12 = arith.constant 1.000000e+00 : f32
    %30 = vector.broadcast %cst_12 : f32 to vector<128x128xf32>
    %31 = arith.addf %30, %29 : vector<128x128xf32>
    %32 = arith.divf %30, %31 : vector<128x128xf32>
    %33 = arith.mulf %27, %32 : vector<128x128xf32>
    %c0_13 = arith.constant 0 : index
    %c0_14 = arith.constant 0 : index
    %34 = vector.load %arg7[%c0_13, %c0_14] : memref<128x128xf32, #tpu.memory_space<vmem>>, vector<128x128xf32>
    %cst_15 = arith.constant dense<0.000000e+00> : vector<128x128xf32>
    %35 = tpu.matmul %33, %34, %cst_15 {dimension_numbers = #tpu.dot_dimension_numbers<[1], [0], [0], [1], [0, 0, 1, 1], [], []>} : vector<128x128xf32>, vector<128x128xf32>, vector<128x128xf32> -> vector<128x128xf32>
    %c0_16 = arith.constant 0 : index
    %c0_17 = arith.constant 0 : index
    %36 = vector.load %arg8[%c0_16, %c0_17] : memref<1x128xf32, #tpu.memory_space<vmem>>, vector<1x128xf32>
    %37 = vector.broadcast %36 : vector<1x128xf32> to vector<128x128xf32>
    %38 = arith.addf %35, %37 : vector<128x128xf32>
    %39 = arith.negf %38 : vector<128x128xf32>
    %40 = math.exp %39 : vector<128x128xf32>
    %cst_18 = arith.constant 1.000000e+00 : f32
    %41 = vector.broadcast %cst_18 : f32 to vector<128x128xf32>
    %42 = arith.addf %41, %40 : vector<128x128xf32>
    %43 = arith.divf %41, %42 : vector<128x128xf32>
    %44 = arith.mulf %38, %43 : vector<128x128xf32>
    %45 = vector.extract_strided_slice %8 {offsets = [0, 0], sizes = [16, 128], strides = [1, 1]} : vector<24x128xi1> to vector<16x128xi1>
    %46 = arith.extui %45 : vector<16x128xi1> to vector<16x128xi32>
    %47 = arith.sitofp %46 : vector<16x128xi32> to vector<16x128xf32>
    %cst_19 = arith.constant dense<0.000000e+00> : vector<16x128xf32>
    %48 = tpu.matmul %47, %44, %cst_19 {dimension_numbers = #tpu.dot_dimension_numbers<[1], [0], [0], [1], [0, 0, 1, 1], [], []>} : vector<16x128xf32>, vector<128x128xf32>, vector<16x128xf32> -> vector<16x128xf32>
    %c0_20 = arith.constant 0 : index
    %c0_21 = arith.constant 0 : index
    %c0_22 = arith.constant 0 : index
    %49 = vector.load %arg9[%c0_20, %c0_21, %c0_22] : memref<1x16x128xf32, #tpu.memory_space<vmem>>, vector<1x16x128xf32>
    %50 = vector.shape_cast %48 : vector<16x128xf32> to vector<1x16x128xf32>
    %51 = arith.addf %49, %50 : vector<1x16x128xf32>
    %c0_23 = arith.constant 0 : index
    %c0_24 = arith.constant 0 : index
    %c0_25 = arith.constant 0 : index
    %52 = vector.load %arg9[%c0_23, %c0_24, %c0_25] : memref<1x16x128xf32, #tpu.memory_space<vmem>>, vector<1x16x128xf32>
    tpu.vector_store %arg9[%c0_23, %c0_24, %c0_25], %51 {strides = array<i32>} : memref<1x16x128xf32, #tpu.memory_space<vmem>>, vector<1x16x128xf32>,
    return
  }
  func.func @transform_0(%arg0: i32, %arg1: i32) -> (i32, i32) {
    %c0_i32 = arith.constant 0 : i32
    %c0_i32_0 = arith.constant 0 : i32
    %c0_i32_1 = arith.constant 0 : i32
    return %c0_i32, %c0_i32_0 : i32, i32
  }
  func.func @transform_1(%arg0: i32, %arg1: i32) -> (i32, i32) {
    %c0_i32 = arith.constant 0 : i32
    %c0_i32_0 = arith.constant 0 : i32
    %c0_i32_1 = arith.constant 0 : i32
    return %c0_i32, %c0_i32_0 : i32, i32
  }
  func.func @transform_2(%arg0: i32, %arg1: i32) -> (i32, i32) {
    %c2_i32 = arith.constant 2 : i32
    %0 = arith.muli %arg0, %c2_i32 : i32
    %1 = arith.addi %0, %arg1 : i32
    %c0_i32 = arith.constant 0 : i32
    %c0_i32_0 = arith.constant 0 : i32
    return %c0_i32, %1 : i32, i32
  }
  func.func @transform_3(%arg0: i32, %arg1: i32) -> (i32, i32) {
    %c2_i32 = arith.constant 2 : i32
    %0 = arith.muli %arg0, %c2_i32 : i32
    %1 = arith.addi %0, %arg1 : i32
    %c0_i32 = arith.constant 0 : i32
    %c0_i32_0 = arith.constant 0 : i32
    return %c0_i32, %1 : i32, i32
  }
  func.func @transform_4(%arg0: i32, %arg1: i32) -> (i32, i32) {
    %c0_i32 = arith.constant 0 : i32
    %c0_i32_0 = arith.constant 0 : i32
    %c0_i32_1 = arith.constant 0 : i32
    return %c0_i32, %c0_i32_0 : i32, i32
  }
  func.func @transform_5(%arg0: i32, %arg1: i32) -> (i32, i32) {
    %c0_i32 = arith.constant 0 : i32
    %c0_i32_0 = arith.constant 0 : i32
    %c0_i32_1 = arith.constant 0 : i32
    return %c0_i32, %c0_i32_0 : i32, i32
  }
  func.func @transform_6(%arg0: i32, %arg1: i32) -> (i32, i32) {
    %c0_i32 = arith.constant 0 : i32
    %c0_i32_0 = arith.constant 0 : i32
    %c0_i32_1 = arith.constant 0 : i32
    return %c0_i32, %c0_i32_0 : i32, i32
  }
  func.func @transform_7(%arg0: i32, %arg1: i32) -> (i32, i32, i32) {
    %c0_i32 = arith.constant 0 : i32
    %c0_i32_0 = arith.constant 0 : i32
    %c0_i32_1 = arith.constant 0 : i32
    return %arg0, %c0_i32, %c0_i32_0 : i32, i32, i32
  }
}

module attributes {stable_mosaic.version = 11 : i64} {
  func.func @_node_kernel(%arg0: i32, %arg1: memref<16x128xf32, #tpu.memory_space<vmem>>, %arg2: memref<2x16x128xf32, #tpu.memory_space<vmem>>, %arg3: memref<128x128xf32, #tpu.memory_space<vmem>>, %arg4: memref<128x128xf32, #tpu.memory_space<vmem>>, %arg5: memref<1x128xf32, #tpu.memory_space<vmem>>, %arg6: memref<128x128xf32, #tpu.memory_space<vmem>>, %arg7: memref<1x128xf32, #tpu.memory_space<vmem>>, %arg8: memref<16x128xf32, #tpu.memory_space<vmem>>) attributes {dimension_semantics = [#tpu.dimension_semantics<parallel>], iteration_bounds = array<i64: 1>, scalar_prefetch = 0 : i64, scratch_operands = 0 : i64, tpu.core_type = #tpu.core_type<tc>, window_params = [{transform_indices = @transform_0, window_bounds = array<i64: 16, 128>}, {transform_indices = @transform_1, window_bounds = array<i64: 2, 16, 128>}, {pipeline_mode = #tpu.pipeline_mode<synchronous>, transform_indices = @transform_2, window_bounds = array<i64: 128, 128>}, {pipeline_mode = #tpu.pipeline_mode<synchronous>, transform_indices = @transform_3, window_bounds = array<i64: 128, 128>}, {pipeline_mode = #tpu.pipeline_mode<synchronous>, transform_indices = @transform_4, window_bounds = array<i64: 1, 128>}, {pipeline_mode = #tpu.pipeline_mode<synchronous>, transform_indices = @transform_5, window_bounds = array<i64: 128, 128>}, {pipeline_mode = #tpu.pipeline_mode<synchronous>, transform_indices = @transform_6, window_bounds = array<i64: 1, 128>}, {transform_indices = @transform_7, window_bounds = array<i64: 16, 128>}]} {
    %c0 = arith.constant 0 : index
    %c0_0 = arith.constant 0 : index
    %c0_1 = arith.constant 0 : index
    %0 = vector.load %arg2[%c0, %c0_0, %c0_1] : memref<2x16x128xf32, #tpu.memory_space<vmem>>, vector<2x16x128xf32>
    %cst = arith.constant dense<0.000000e+00> : vector<16x128xf32>
    %1 = vector.multi_reduction <add>, %0, %cst [0] : vector<2x16x128xf32> to vector<16x128xf32>
    %c0_2 = arith.constant 0 : index
    %c0_3 = arith.constant 0 : index
    %2 = vector.load %arg1[%c0_2, %c0_3] : memref<16x128xf32, #tpu.memory_space<vmem>>, vector<16x128xf32>
    %c0_4 = arith.constant 0 : index
    %c0_5 = arith.constant 0 : index
    %3 = vector.load %arg3[%c0_4, %c0_5] : memref<128x128xf32, #tpu.memory_space<vmem>>, vector<128x128xf32>
    %cst_6 = arith.constant dense<0.000000e+00> : vector<16x128xf32>
    %4 = tpu.matmul %2, %3, %cst_6 {dimension_numbers = #tpu.dot_dimension_numbers<[1], [0], [0], [1], [0, 0, 1, 1], [], []>} : vector<16x128xf32>, vector<128x128xf32>, vector<16x128xf32> -> vector<16x128xf32>
    %c0_7 = arith.constant 0 : index
    %c0_8 = arith.constant 0 : index
    %5 = vector.load %arg4[%c0_7, %c0_8] : memref<128x128xf32, #tpu.memory_space<vmem>>, vector<128x128xf32>
    %cst_9 = arith.constant dense<0.000000e+00> : vector<16x128xf32>
    %6 = tpu.matmul %1, %5, %cst_9 {dimension_numbers = #tpu.dot_dimension_numbers<[1], [0], [0], [1], [0, 0, 1, 1], [], []>} : vector<16x128xf32>, vector<128x128xf32>, vector<16x128xf32> -> vector<16x128xf32>
    %7 = arith.addf %4, %6 : vector<16x128xf32>
    %c0_10 = arith.constant 0 : index
    %c0_11 = arith.constant 0 : index
    %8 = vector.load %arg5[%c0_10, %c0_11] : memref<1x128xf32, #tpu.memory_space<vmem>>, vector<1x128xf32>
    %9 = vector.broadcast %8 : vector<1x128xf32> to vector<16x128xf32>
    %10 = arith.addf %7, %9 : vector<16x128xf32>
    %11 = arith.negf %10 : vector<16x128xf32>
    %12 = math.exp %11 : vector<16x128xf32>
    %cst_12 = arith.constant 1.000000e+00 : f32
    %13 = vector.broadcast %cst_12 : f32 to vector<16x128xf32>
    %14 = arith.addf %13, %12 : vector<16x128xf32>
    %15 = arith.divf %13, %14 : vector<16x128xf32>
    %16 = arith.mulf %10, %15 : vector<16x128xf32>
    %c0_13 = arith.constant 0 : index
    %c0_14 = arith.constant 0 : index
    %17 = vector.load %arg6[%c0_13, %c0_14] : memref<128x128xf32, #tpu.memory_space<vmem>>, vector<128x128xf32>
    %cst_15 = arith.constant dense<0.000000e+00> : vector<16x128xf32>
    %18 = tpu.matmul %16, %17, %cst_15 {dimension_numbers = #tpu.dot_dimension_numbers<[1], [0], [0], [1], [0, 0, 1, 1], [], []>} : vector<16x128xf32>, vector<128x128xf32>, vector<16x128xf32> -> vector<16x128xf32>
    %c0_16 = arith.constant 0 : index
    %c0_17 = arith.constant 0 : index
    %19 = vector.load %arg7[%c0_16, %c0_17] : memref<1x128xf32, #tpu.memory_space<vmem>>, vector<1x128xf32>
    %20 = vector.broadcast %19 : vector<1x128xf32> to vector<16x128xf32>
    %21 = arith.addf %18, %20 : vector<16x128xf32>
    %22 = arith.addf %2, %21 : vector<16x128xf32>
    %c0_18 = arith.constant 0 : index
    %c0_19 = arith.constant 0 : index
    %23 = vector.load %arg8[%c0_18, %c0_19] : memref<16x128xf32, #tpu.memory_space<vmem>>, vector<16x128xf32>
    tpu.vector_store %arg8[%c0_18, %c0_19], %22 {strides = array<i32>} : memref<16x128xf32, #tpu.memory_space<vmem>>, vector<16x128xf32>,
    return
  }
  func.func @transform_0(%arg0: i32) -> (i32, i32) {
    %c0_i32 = arith.constant 0 : i32
    %c0_i32_0 = arith.constant 0 : i32
    return %arg0, %c0_i32 : i32, i32
  }
  func.func @transform_1(%arg0: i32) -> (i32, i32, i32) {
    %c0_i32 = arith.constant 0 : i32
    %c0_i32_0 = arith.constant 0 : i32
    %c0_i32_1 = arith.constant 0 : i32
    return %c0_i32, %arg0, %c0_i32_0 : i32, i32, i32
  }
  func.func @transform_2(%arg0: i32) -> (i32, i32) {
    %c0_i32 = arith.constant 0 : i32
    %c0_i32_0 = arith.constant 0 : i32
    %c0_i32_1 = arith.constant 0 : i32
    return %c0_i32, %c0_i32_0 : i32, i32
  }
  func.func @transform_3(%arg0: i32) -> (i32, i32) {
    %c0_i32 = arith.constant 0 : i32
    %c0_i32_0 = arith.constant 0 : i32
    %c0_i32_1 = arith.constant 0 : i32
    return %c0_i32, %c0_i32_0 : i32, i32
  }
  func.func @transform_4(%arg0: i32) -> (i32, i32) {
    %c0_i32 = arith.constant 0 : i32
    %c0_i32_0 = arith.constant 0 : i32
    %c0_i32_1 = arith.constant 0 : i32
    return %c0_i32, %c0_i32_0 : i32, i32
  }
  func.func @transform_5(%arg0: i32) -> (i32, i32) {
    %c0_i32 = arith.constant 0 : i32
    %c0_i32_0 = arith.constant 0 : i32
    %c0_i32_1 = arith.constant 0 : i32
    return %c0_i32, %c0_i32_0 : i32, i32
  }
  func.func @transform_6(%arg0: i32) -> (i32, i32) {
    %c0_i32 = arith.constant 0 : i32
    %c0_i32_0 = arith.constant 0 : i32
    %c0_i32_1 = arith.constant 0 : i32
    return %c0_i32, %c0_i32_0 : i32, i32
  }
  func.func @transform_7(%arg0: i32) -> (i32, i32) {
    %c0_i32 = arith.constant 0 : i32
    %c0_i32_0 = arith.constant 0 : i32
    return %arg0, %c0_i32 : i32, i32
  }
}

module attributes {stable_mosaic.version = 11 : i64} {
  func.func @_edge_kernel(%arg0: i32, %arg1: i32, %arg2: memref<24x128xf32, #tpu.memory_space<vmem>>, %arg3: memref<24x128xf32, #tpu.memory_space<vmem>>, %arg4: memref<2x128xi32, #tpu.memory_space<vmem>>, %arg5: memref<1x128xf32, #tpu.memory_space<vmem>>, %arg6: memref<1x128xf32, #tpu.memory_space<vmem>>, %arg7: memref<128x128xf32, #tpu.memory_space<vmem>>, %arg8: memref<1x128xf32, #tpu.memory_space<vmem>>, %arg9: memref<1x16x128xf32, #tpu.memory_space<vmem>>) attributes {dimension_semantics = [#tpu.dimension_semantics<parallel>, #tpu.dimension_semantics<arbitrary>], iteration_bounds = array<i64: 2, 2>, scalar_prefetch = 0 : i64, scratch_operands = 0 : i64, tpu.core_type = #tpu.core_type<tc>, window_params = [{pipeline_mode = #tpu.pipeline_mode<synchronous>, transform_indices = @transform_0, window_bounds = array<i64: 24, 128>}, {pipeline_mode = #tpu.pipeline_mode<synchronous>, transform_indices = @transform_1, window_bounds = array<i64: 24, 128>}, {transform_indices = @transform_2, window_bounds = array<i64: 2, 128>}, {transform_indices = @transform_3, window_bounds = array<i64: 1, 128>}, {pipeline_mode = #tpu.pipeline_mode<synchronous>, transform_indices = @transform_4, window_bounds = array<i64: 1, 128>}, {pipeline_mode = #tpu.pipeline_mode<synchronous>, transform_indices = @transform_5, window_bounds = array<i64: 128, 128>}, {pipeline_mode = #tpu.pipeline_mode<synchronous>, transform_indices = @transform_6, window_bounds = array<i64: 1, 128>}, {transform_indices = @transform_7, window_bounds = array<i64: 1, 16, 128>}]} {
    %c0_i32 = arith.constant 0 : i32
    %0 = arith.cmpi eq, %arg1, %c0_i32 : i32
    %1 = arith.extui %0 : i1 to i32
    %c0_i32_0 = arith.constant 0 : i32
    %2 = arith.cmpi ne, %1, %c0_i32_0 : i32
    scf.if %2 {
      %cst_26 = arith.constant 0.000000e+00 : f32
      %53 = vector.broadcast %cst_26 : f32 to vector<1x16x128xf32>
      %c0_27 = arith.constant 0 : index
      %c0_28 = arith.constant 0 : index
      %c0_29 = arith.constant 0 : index
      %54 = vector.load %arg9[%c0_27, %c0_28, %c0_29] : memref<1x16x128xf32, #tpu.memory_space<vmem>>, vector<1x16x128xf32>
      tpu.vector_store %arg9[%c0_27, %c0_28, %c0_29], %53 {strides = array<i32>} : memref<1x16x128xf32, #tpu.memory_space<vmem>>, vector<1x16x128xf32>,
    } else {
    }
    %c0 = arith.constant 0 : index
    %c0_1 = arith.constant 0 : index
    %3 = vector.load %arg5[%c0, %c0_1] : memref<1x128xf32, #tpu.memory_space<vmem>>, vector<1x128xf32>
    %c0_2 = arith.constant 0 : index
    %c0_3 = arith.constant 0 : index
    %4 = vector.load %arg4[%c0_2, %c0_3] : memref<2x128xi32, #tpu.memory_space<vmem>>, vector<1x128xi32>
    %c1 = arith.constant 1 : index
    %c0_4 = arith.constant 0 : index
    %5 = vector.load %arg4[%c1, %c0_4] : memref<2x128xi32, #tpu.memory_space<vmem>>, vector<1x128xi32>
    %6 = tpu.iota {dimensions = array<i32: 0>} : vector<24x128xi32>
    %7 = vector.broadcast %4 : vector<1x128xi32> to vector<24x128xi32>
    %8 = arith.cmpi eq, %6, %7 : vector<24x128xi32>
    %c16_i32 = arith.constant 16 : i32
    %9 = vector.broadcast %c16_i32 : i32 to vector<24x128xi32>
    %10 = arith.cmpi eq, %6, %9 : vector<24x128xi32>
    %11 = arith.extui %8 : vector<24x128xi1> to vector<24x128xi32>
    %12 = arith.sitofp %11 : vector<24x128xi32> to vector<24x128xf32>
    %13 = vector.shape_cast %3 : vector<1x128xf32> to vector<1x128xf32>
    %14 = vector.broadcast %13 : vector<1x128xf32> to vector<24x128xf32>
    %15 = arith.select %10, %14, %12 : vector<24x128xi1>, vector<24x128xf32>
    %16 = vector.broadcast %5 : vector<1x128xi32> to vector<24x128xi32>
    %17 = arith.cmpi eq, %6, %16 : vector<24x128xi32>
    %18 = arith.extui %17 : vector<24x128xi1> to vector<24x128xi32>
    %19 = arith.sitofp %18 : vector<24x128xi32> to vector<24x128xf32>
    %c0_5 = arith.constant 0 : index
    %c0_6 = arith.constant 0 : index
    %20 = vector.load %arg2[%c0_5, %c0_6] : memref<24x128xf32, #tpu.memory_space<vmem>>, vector<24x128xf32>
    %cst = arith.constant dense<0.000000e+00> : vector<128x128xf32>
    %21 = tpu.matmul %15, %20, %cst {dimension_numbers = #tpu.dot_dimension_numbers<[0], [0], [1], [1], [0, 1, 1, 1], [], []>} : vector<24x128xf32>, vector<24x128xf32>, vector<128x128xf32> -> vector<128x128xf32>
    %c0_7 = arith.constant 0 : index
    %c0_8 = arith.constant 0 : index
    %22 = vector.load %arg3[%c0_7, %c0_8] : memref<24x128xf32, #tpu.memory_space<vmem>>, vector<24x128xf32>
    %cst_9 = arith.constant dense<0.000000e+00> : vector<128x128xf32>
    %23 = tpu.matmul %19, %22, %cst_9 {dimension_numbers = #tpu.dot_dimension_numbers<[0], [0], [1], [1], [0, 1, 1, 1], [], []>} : vector<24x128xf32>, vector<24x128xf32>, vector<128x128xf32> -> vector<128x128xf32>
    %24 = arith.addf %21, %23 : vector<128x128xf32>
    %c0_10 = arith.constant 0 : index
    %c0_11 = arith.constant 0 : index
    %25 = vector.load %arg6[%c0_10, %c0_11] : memref<1x128xf32, #tpu.memory_space<vmem>>, vector<1x128xf32>
    %26 = vector.broadcast %25 : vector<1x128xf32> to vector<128x128xf32>
    %27 = arith.addf %24, %26 : vector<128x128xf32>
    %28 = arith.negf %27 : vector<128x128xf32>
    %29 = math.exp %28 : vector<128x128xf32>
    %cst_12 = arith.constant 1.000000e+00 : f32
    %30 = vector.broadcast %cst_12 : f32 to vector<128x128xf32>
    %31 = arith.addf %30, %29 : vector<128x128xf32>
    %32 = arith.divf %30, %31 : vector<128x128xf32>
    %33 = arith.mulf %27, %32 : vector<128x128xf32>
    %c0_13 = arith.constant 0 : index
    %c0_14 = arith.constant 0 : index
    %34 = vector.load %arg7[%c0_13, %c0_14] : memref<128x128xf32, #tpu.memory_space<vmem>>, vector<128x128xf32>
    %cst_15 = arith.constant dense<0.000000e+00> : vector<128x128xf32>
    %35 = tpu.matmul %33, %34, %cst_15 {dimension_numbers = #tpu.dot_dimension_numbers<[1], [0], [0], [1], [0, 0, 1, 1], [], []>} : vector<128x128xf32>, vector<128x128xf32>, vector<128x128xf32> -> vector<128x128xf32>
    %c0_16 = arith.constant 0 : index
    %c0_17 = arith.constant 0 : index
    %36 = vector.load %arg8[%c0_16, %c0_17] : memref<1x128xf32, #tpu.memory_space<vmem>>, vector<1x128xf32>
    %37 = vector.broadcast %36 : vector<1x128xf32> to vector<128x128xf32>
    %38 = arith.addf %35, %37 : vector<128x128xf32>
    %39 = arith.negf %38 : vector<128x128xf32>
    %40 = math.exp %39 : vector<128x128xf32>
    %cst_18 = arith.constant 1.000000e+00 : f32
    %41 = vector.broadcast %cst_18 : f32 to vector<128x128xf32>
    %42 = arith.addf %41, %40 : vector<128x128xf32>
    %43 = arith.divf %41, %42 : vector<128x128xf32>
    %44 = arith.mulf %38, %43 : vector<128x128xf32>
    %45 = vector.extract_strided_slice %8 {offsets = [0, 0], sizes = [16, 128], strides = [1, 1]} : vector<24x128xi1> to vector<16x128xi1>
    %46 = arith.extui %45 : vector<16x128xi1> to vector<16x128xi32>
    %47 = arith.sitofp %46 : vector<16x128xi32> to vector<16x128xf32>
    %cst_19 = arith.constant dense<0.000000e+00> : vector<16x128xf32>
    %48 = tpu.matmul %47, %44, %cst_19 {dimension_numbers = #tpu.dot_dimension_numbers<[1], [0], [0], [1], [0, 0, 1, 1], [], []>} : vector<16x128xf32>, vector<128x128xf32>, vector<16x128xf32> -> vector<16x128xf32>
    %c0_20 = arith.constant 0 : index
    %c0_21 = arith.constant 0 : index
    %c0_22 = arith.constant 0 : index
    %49 = vector.load %arg9[%c0_20, %c0_21, %c0_22] : memref<1x16x128xf32, #tpu.memory_space<vmem>>, vector<1x16x128xf32>
    %50 = vector.shape_cast %48 : vector<16x128xf32> to vector<1x16x128xf32>
    %51 = arith.addf %49, %50 : vector<1x16x128xf32>
    %c0_23 = arith.constant 0 : index
    %c0_24 = arith.constant 0 : index
    %c0_25 = arith.constant 0 : index
    %52 = vector.load %arg9[%c0_23, %c0_24, %c0_25] : memref<1x16x128xf32, #tpu.memory_space<vmem>>, vector<1x16x128xf32>
    tpu.vector_store %arg9[%c0_23, %c0_24, %c0_25], %51 {strides = array<i32>} : memref<1x16x128xf32, #tpu.memory_space<vmem>>, vector<1x16x128xf32>,
    return
  }
  func.func @transform_0(%arg0: i32, %arg1: i32) -> (i32, i32) {
    %c0_i32 = arith.constant 0 : i32
    %c0_i32_0 = arith.constant 0 : i32
    %c0_i32_1 = arith.constant 0 : i32
    return %c0_i32, %c0_i32_0 : i32, i32
  }
  func.func @transform_1(%arg0: i32, %arg1: i32) -> (i32, i32) {
    %c0_i32 = arith.constant 0 : i32
    %c0_i32_0 = arith.constant 0 : i32
    %c0_i32_1 = arith.constant 0 : i32
    return %c0_i32, %c0_i32_0 : i32, i32
  }
  func.func @transform_2(%arg0: i32, %arg1: i32) -> (i32, i32) {
    %c2_i32 = arith.constant 2 : i32
    %0 = arith.muli %arg0, %c2_i32 : i32
    %1 = arith.addi %0, %arg1 : i32
    %c0_i32 = arith.constant 0 : i32
    %c0_i32_0 = arith.constant 0 : i32
    return %c0_i32, %1 : i32, i32
  }
  func.func @transform_3(%arg0: i32, %arg1: i32) -> (i32, i32) {
    %c2_i32 = arith.constant 2 : i32
    %0 = arith.muli %arg0, %c2_i32 : i32
    %1 = arith.addi %0, %arg1 : i32
    %c0_i32 = arith.constant 0 : i32
    %c0_i32_0 = arith.constant 0 : i32
    return %c0_i32, %1 : i32, i32
  }
  func.func @transform_4(%arg0: i32, %arg1: i32) -> (i32, i32) {
    %c0_i32 = arith.constant 0 : i32
    %c0_i32_0 = arith.constant 0 : i32
    %c0_i32_1 = arith.constant 0 : i32
    return %c0_i32, %c0_i32_0 : i32, i32
  }
  func.func @transform_5(%arg0: i32, %arg1: i32) -> (i32, i32) {
    %c0_i32 = arith.constant 0 : i32
    %c0_i32_0 = arith.constant 0 : i32
    %c0_i32_1 = arith.constant 0 : i32
    return %c0_i32, %c0_i32_0 : i32, i32
  }
  func.func @transform_6(%arg0: i32, %arg1: i32) -> (i32, i32) {
    %c0_i32 = arith.constant 0 : i32
    %c0_i32_0 = arith.constant 0 : i32
    %c0_i32_1 = arith.constant 0 : i32
    return %c0_i32, %c0_i32_0 : i32, i32
  }
  func.func @transform_7(%arg0: i32, %arg1: i32) -> (i32, i32, i32) {
    %c0_i32 = arith.constant 0 : i32
    %c0_i32_0 = arith.constant 0 : i32
    %c0_i32_1 = arith.constant 0 : i32
    return %arg0, %c0_i32, %c0_i32_0 : i32, i32, i32
  }
}

module attributes {stable_mosaic.version = 11 : i64} {
  func.func @_node_kernel(%arg0: i32, %arg1: memref<16x128xf32, #tpu.memory_space<vmem>>, %arg2: memref<2x16x128xf32, #tpu.memory_space<vmem>>, %arg3: memref<128x128xf32, #tpu.memory_space<vmem>>, %arg4: memref<128x128xf32, #tpu.memory_space<vmem>>, %arg5: memref<1x128xf32, #tpu.memory_space<vmem>>, %arg6: memref<128x128xf32, #tpu.memory_space<vmem>>, %arg7: memref<1x128xf32, #tpu.memory_space<vmem>>, %arg8: memref<16x128xf32, #tpu.memory_space<vmem>>) attributes {dimension_semantics = [#tpu.dimension_semantics<parallel>], iteration_bounds = array<i64: 1>, scalar_prefetch = 0 : i64, scratch_operands = 0 : i64, tpu.core_type = #tpu.core_type<tc>, window_params = [{transform_indices = @transform_0, window_bounds = array<i64: 16, 128>}, {transform_indices = @transform_1, window_bounds = array<i64: 2, 16, 128>}, {pipeline_mode = #tpu.pipeline_mode<synchronous>, transform_indices = @transform_2, window_bounds = array<i64: 128, 128>}, {pipeline_mode = #tpu.pipeline_mode<synchronous>, transform_indices = @transform_3, window_bounds = array<i64: 128, 128>}, {pipeline_mode = #tpu.pipeline_mode<synchronous>, transform_indices = @transform_4, window_bounds = array<i64: 1, 128>}, {pipeline_mode = #tpu.pipeline_mode<synchronous>, transform_indices = @transform_5, window_bounds = array<i64: 128, 128>}, {pipeline_mode = #tpu.pipeline_mode<synchronous>, transform_indices = @transform_6, window_bounds = array<i64: 1, 128>}, {transform_indices = @transform_7, window_bounds = array<i64: 16, 128>}]} {
    %c0 = arith.constant 0 : index
    %c0_0 = arith.constant 0 : index
    %c0_1 = arith.constant 0 : index
    %0 = vector.load %arg2[%c0, %c0_0, %c0_1] : memref<2x16x128xf32, #tpu.memory_space<vmem>>, vector<2x16x128xf32>
    %cst = arith.constant dense<0.000000e+00> : vector<16x128xf32>
    %1 = vector.multi_reduction <add>, %0, %cst [0] : vector<2x16x128xf32> to vector<16x128xf32>
    %c0_2 = arith.constant 0 : index
    %c0_3 = arith.constant 0 : index
    %2 = vector.load %arg1[%c0_2, %c0_3] : memref<16x128xf32, #tpu.memory_space<vmem>>, vector<16x128xf32>
    %c0_4 = arith.constant 0 : index
    %c0_5 = arith.constant 0 : index
    %3 = vector.load %arg3[%c0_4, %c0_5] : memref<128x128xf32, #tpu.memory_space<vmem>>, vector<128x128xf32>
    %cst_6 = arith.constant dense<0.000000e+00> : vector<16x128xf32>
    %4 = tpu.matmul %2, %3, %cst_6 {dimension_numbers = #tpu.dot_dimension_numbers<[1], [0], [0], [1], [0, 0, 1, 1], [], []>} : vector<16x128xf32>, vector<128x128xf32>, vector<16x128xf32> -> vector<16x128xf32>
    %c0_7 = arith.constant 0 : index
    %c0_8 = arith.constant 0 : index
    %5 = vector.load %arg4[%c0_7, %c0_8] : memref<128x128xf32, #tpu.memory_space<vmem>>, vector<128x128xf32>
    %cst_9 = arith.constant dense<0.000000e+00> : vector<16x128xf32>
    %6 = tpu.matmul %1, %5, %cst_9 {dimension_numbers = #tpu.dot_dimension_numbers<[1], [0], [0], [1], [0, 0, 1, 1], [], []>} : vector<16x128xf32>, vector<128x128xf32>, vector<16x128xf32> -> vector<16x128xf32>
    %7 = arith.addf %4, %6 : vector<16x128xf32>
    %c0_10 = arith.constant 0 : index
    %c0_11 = arith.constant 0 : index
    %8 = vector.load %arg5[%c0_10, %c0_11] : memref<1x128xf32, #tpu.memory_space<vmem>>, vector<1x128xf32>
    %9 = vector.broadcast %8 : vector<1x128xf32> to vector<16x128xf32>
    %10 = arith.addf %7, %9 : vector<16x128xf32>
    %11 = arith.negf %10 : vector<16x128xf32>
    %12 = math.exp %11 : vector<16x128xf32>
    %cst_12 = arith.constant 1.000000e+00 : f32
    %13 = vector.broadcast %cst_12 : f32 to vector<16x128xf32>
    %14 = arith.addf %13, %12 : vector<16x128xf32>
    %15 = arith.divf %13, %14 : vector<16x128xf32>
    %16 = arith.mulf %10, %15 : vector<16x128xf32>
    %c0_13 = arith.constant 0 : index
    %c0_14 = arith.constant 0 : index
    %17 = vector.load %arg6[%c0_13, %c0_14] : memref<128x128xf32, #tpu.memory_space<vmem>>, vector<128x128xf32>
    %cst_15 = arith.constant dense<0.000000e+00> : vector<16x128xf32>
    %18 = tpu.matmul %16, %17, %cst_15 {dimension_numbers = #tpu.dot_dimension_numbers<[1], [0], [0], [1], [0, 0, 1, 1], [], []>} : vector<16x128xf32>, vector<128x128xf32>, vector<16x128xf32> -> vector<16x128xf32>
    %c0_16 = arith.constant 0 : index
    %c0_17 = arith.constant 0 : index
    %19 = vector.load %arg7[%c0_16, %c0_17] : memref<1x128xf32, #tpu.memory_space<vmem>>, vector<1x128xf32>
    %20 = vector.broadcast %19 : vector<1x128xf32> to vector<16x128xf32>
    %21 = arith.addf %18, %20 : vector<16x128xf32>
    %22 = arith.addf %2, %21 : vector<16x128xf32>
    %c0_18 = arith.constant 0 : index
    %c0_19 = arith.constant 0 : index
    %23 = vector.load %arg8[%c0_18, %c0_19] : memref<16x128xf32, #tpu.memory_space<vmem>>, vector<16x128xf32>
    tpu.vector_store %arg8[%c0_18, %c0_19], %22 {strides = array<i32>} : memref<16x128xf32, #tpu.memory_space<vmem>>, vector<16x128xf32>,
    return
  }
  func.func @transform_0(%arg0: i32) -> (i32, i32) {
    %c0_i32 = arith.constant 0 : i32
    %c0_i32_0 = arith.constant 0 : i32
    return %arg0, %c0_i32 : i32, i32
  }
  func.func @transform_1(%arg0: i32) -> (i32, i32, i32) {
    %c0_i32 = arith.constant 0 : i32
    %c0_i32_0 = arith.constant 0 : i32
    %c0_i32_1 = arith.constant 0 : i32
    return %c0_i32, %arg0, %c0_i32_0 : i32, i32, i32
  }
  func.func @transform_2(%arg0: i32) -> (i32, i32) {
    %c0_i32 = arith.constant 0 : i32
    %c0_i32_0 = arith.constant 0 : i32
    %c0_i32_1 = arith.constant 0 : i32
    return %c0_i32, %c0_i32_0 : i32, i32
  }
  func.func @transform_3(%arg0: i32) -> (i32, i32) {
    %c0_i32 = arith.constant 0 : i32
    %c0_i32_0 = arith.constant 0 : i32
    %c0_i32_1 = arith.constant 0 : i32
    return %c0_i32, %c0_i32_0 : i32, i32
  }
  func.func @transform_4(%arg0: i32) -> (i32, i32) {
    %c0_i32 = arith.constant 0 : i32
    %c0_i32_0 = arith.constant 0 : i32
    %c0_i32_1 = arith.constant 0 : i32
    return %c0_i32, %c0_i32_0 : i32, i32
  }
  func.func @transform_5(%arg0: i32) -> (i32, i32) {
    %c0_i32 = arith.constant 0 : i32
    %c0_i32_0 = arith.constant 0 : i32
    %c0_i32_1 = arith.constant 0 : i32
    return %c0_i32, %c0_i32_0 : i32, i32
  }
  func.func @transform_6(%arg0: i32) -> (i32, i32) {
    %c0_i32 = arith.constant 0 : i32
    %c0_i32_0 = arith.constant 0 : i32
    %c0_i32_1 = arith.constant 0 : i32
    return %c0_i32, %c0_i32_0 : i32, i32
  }
  func.func @transform_7(%arg0: i32) -> (i32, i32) {
    %c0_i32 = arith.constant 0 : i32
    %c0_i32_0 = arith.constant 0 : i32
    return %arg0, %c0_i32 : i32, i32
  }
}

</mosaic_0001>

<bundles_post_ra>
// kernel: egcl_encode_forward.3
= control target key start
LH: loop header
LB: loop body
LE: loop exit
PB: predicated region body
PF: predicated region fallthrough
CT: control target
= control target key end

     0   :  { %s776_s0 = inlined_call_operand.vmem [shape: f32[16,128], index: 0, kind: input, shape index: {}]   ;;  %s777_s1 = inlined_call_operand.vmem [shape: f32[2,16,128], index: 1, kind: input, shape index: {}]   ;;  %s778_s2 = inlined_call_operand.vmem [shape: f32[128,128], index: 2, kind: input, shape index: {}]   ;;  %s779_s3 = inlined_call_operand.vmem [shape: f32[128,128], index: 3, kind: input, shape index: {}]   ;;  %s780_s4 = inlined_call_operand.vmem [shape: f32[1,128], index: 4, kind: input, shape index: {}]   ;;  %s781_s5 = inlined_call_operand.vmem [shape: f32[128,128], index: 5, kind: input, shape index: {}]   ;;  %s782_s6 = inlined_call_operand.vmem [shape: f32[1,128], index: 6, kind: input, shape index: {}]   ;;  %s783_s7 = inlined_call_operand.hbm [shape: f32[16,128], index: 7, kind: output, shape index: {}]  }
   0x1   :  { %v66_v0 = vld [vmem:[%s779_s3 + $0x78] sm:$0xff]  ;;  %v65_v2 = vld [vmem:[%s779_s3 + $0x70] sm:$0xff]  ;;  %v64_v4 = vld [vmem:[%s779_s3 + $0x68] sm:$0xff] }
   0x2   :  { %v50_v1 = vld [vmem:[%s778_s2 + $0x78] sm:$0xff]  ;;  %416 = vmatprep.subr.mxu0 %v66_v0  ;;  %v49_v3 = vld [vmem:[%s778_s2 + $0x70] sm:$0xff]  ;;  %v48_v5 = vld [vmem:[%s778_s2 + $0x68] sm:$0xff] }
   0x3   :  { %451 = vmatprep.subr.mxu1 %v50_v1  ;;  %417 = vmatpush3.msra.mxu0 %v66_v0  ;;  %v63_v6 = vld [vmem:[%s779_s3 + $0x60] sm:$0xff]  ;;  %v62_v8 = vld [vmem:[%s779_s3 + $0x58] sm:$0xff]  ;;  %v61_v10 = vld [vmem:[%s779_s3 + $0x50] sm:$0xff] }
   0x4   :  { %452 = vmatpush3.msra.mxu1 %v50_v1  ;;  %418 = vmatprep.subr.mxu0 %v65_v2  ;;  %v47_v7 = vld [vmem:[%s778_s2 + $0x60] sm:$0xff]  ;;  %v46_v9 = vld [vmem:[%s778_s2 + $0x58] sm:$0xff]  ;;  %v45_v11 = vld [vmem:[%s778_s2 + $0x50] sm:$0xff] }
   0x5   :  { %453 = vmatprep.subr.mxu1 %v49_v3  ;;  %419 = vmatpush3.msra.mxu0 %v65_v2  ;;  %v60_v12 = vld [vmem:[%s779_s3 + $0x48] sm:$0xff]  ;;  %v59_v14 = vld [vmem:[%s779_s3 + $0x40] sm:$0xff] }
   0x6   :  { %454 = vmatpush3.msra.mxu1 %v49_v3  ;;  %420 = vmatprep.subr.mxu0 %v64_v4  ;;  %v44_v13 = vld [vmem:[%s778_s2 + $0x48] sm:$0xff]  ;;  %v43_v15 = vld [vmem:[%s778_s2 + $0x40] sm:$0xff] }
   0x7   :  { %455 = vmatprep.subr.mxu1 %v48_v5  ;;  %421 = vmatpush3.msra.mxu0 %v64_v4 }
   0x8   :  { %456 = vmatpush3.msra.mxu1 %v48_v5  ;;  %422 = vmatprep.subr.mxu0 %v63_v6 }
   0x9   :  { %457 = vmatprep.subr.mxu1 %v47_v7  ;;  %423 = vmatpush3.msra.mxu0 %v63_v6 }
   0xa   :  { %458 = vmatpush3.msra.mxu1 %v47_v7  ;;  %424 = vmatprep.subr.mxu0 %v62_v8 }
   0xb   :  { %459 = vmatprep.subr.mxu1 %v46_v9  ;;  %425 = vmatpush3.msra.mxu0 %v62_v8 }
   0xc   :  { %460 = vmatpush3.msra.mxu1 %v46_v9  ;;  %426 = vmatprep.subr.mxu0 %v61_v10 }
   0xd   :  { %461 = vmatprep.subr.mxu1 %v45_v11  ;;  %427 = vmatpush3.msra.mxu0 %v61_v10 }
   0xe   :  { %462 = vmatpush3.msra.mxu1 %v45_v11 }
   0xf   :  { %12 = vsyncpa [#allocation3], 0  ;;  %428 = vmatprep.subr.mxu0 %v60_v12  ;;  %463 = vmatprep.subr.mxu1 %v44_v13  ;;  %v58_v16 = vld [vmem:[%s779_s3 + $0x38] sm:$0xff]  ;;  %v57_v18 = vld [vmem:[%s779_s3 + $0x30] sm:$0xff]  ;;  %s554_s11 = smov [#allocation2]  }
  0x10   :  { %429 = vmatpush3.msra.mxu0 %v60_v12  ;;  %464 = vmatpush3.msra.mxu1 %v44_v13  ;;  %v42_v17 = vld [vmem:[%s778_s2 + $0x38] sm:$0xff]  ;;  %v41_v19 = vld [vmem:[%s778_s2 + $0x30] sm:$0xff]  ;;  %v56_v20 = vld [vmem:[%s779_s3 + $0x28] sm:$0xff]  ;;  %s347_s12 = sshll.u32 %s554_s11, 4  ;;  %s348_s12 = int_to_ptr.vmem [resolvable:$true] %s347_s12 }
  0x11   :  { %430 = vmatprep.subr.mxu0 %v59_v14  ;;  %465 = vmatprep.subr.mxu1 %v43_v15  ;;  %v40_v21 = vld [vmem:[%s778_s2 + $0x28] sm:$0xff]  ;;  %v55_v22 = vld [vmem:[%s779_s3 + $0x20] sm:$0xff]  ;;  %v54_v24 = vld [vmem:[%s779_s3 + $0x18] sm:$0xff]  ;;  %s532_s13 = scalar_lea.vmem %s348_s12, 256  ;;  %p537_p1 = scmp.lt.s32.totalorder %s348_s12, %s348_s12 }
  0x12   :  { %431 = vmatpush3.msra.mxu0 %v59_v14  ;;  %466 = vmatpush3.msra.mxu1 %v43_v15  ;;  %v39_v23 = vld [vmem:[%s778_s2 + $0x20] sm:$0xff]  ;;  %v38_v25 = vld [vmem:[%s778_s2 + $0x18] sm:$0xff]  ;;  %v53_v26 = vld [vmem:[%s779_s3 + $0x10] sm:$0xff]  ;;  %p533_p0 = scmp.ne.s32.totalorder %s348_s12, %s532_s13  ;;  %p538_p2 = scmp.lt.s32.totalorder %s532_s13, %s532_s13 }
  0x13   :  { %432 = vmatprep.subr.mxu0 %v58_v16  ;;  %467 = vmatprep.subr.mxu1 %v42_v17  ;;  %v37_v27 = vld [vmem:[%s778_s2 + $0x10] sm:$0xff]  ;;  %v27_v28 = vld [vmem:[%s777_s1] sm:$0xff]  ;;  %v52_v30 = vld [vmem:[%s779_s3 + $0x8] sm:$0xff] }
  0x14   :  { %433 = vmatpush3.msra.mxu0 %v58_v16  ;;  %468 = vmatpush3.msra.mxu1 %v42_v17  ;;  %v29_v29 = vld [vmem:[%s777_s1 + $0x10] sm:$0xff]  ;;  %v36_v31 = vld [vmem:[%s778_s2 + $0x8] sm:$0xff]  ;;  %v30_v33 = vld [vmem:[%s777_s1 + $0x18] sm:$0xff]  ;;  %p539_p3 = por %p538_p2, %p537_p1 }
  0x15   :  { %434 = vmatprep.subr.mxu0 %v57_v18  ;;  %469 = vmatprep.subr.mxu1 %v41_v19  ;;  %v28_v32 = vld [vmem:[%s777_s1 + $0x8] sm:$0xff]  ;;  %v51_v34 = vld [vmem:[%s779_s3] sm:$0xff]  ;;  %v31_v36 = vadd.f32 %v29_v29, %v27_v28  ;;  %v255_v40 = vld [vmem:[%s781_s5 + $0x78] sm:$0xff] }
  0x16   :  { %435 = vmatpush3.msra.mxu0 %v57_v18  ;;  %470 = vmatpush3.msra.mxu1 %v41_v19  ;;  %v35_v35 = vld [vmem:[%s778_s2] sm:$0xff]  ;;  %v32_v38 = vadd.f32 %v30_v33, %v28_v32  ;;  %v713_v39 = vld [vmem:[%s776_s0 + $0x8] sm:$0xff]  ;;  %v254_v41 = vld [vmem:[%s781_s5 + $0x70] sm:$0xff]  ;;  %p540_p4 = pnand %p539_p3, %p533_p0 }
  0x17   :  { %436 = vmatprep.subr.mxu0 %v56_v20  ;;  %471 = vmatprep.subr.mxu1 %v40_v21  ;;  %v708_v37 = vld [vmem:[%s776_s0] sm:$0xff]  ;;  %v253_v42 = vld [vmem:[%s781_s5 + $0x68] sm:$0xff]  ;;  %v251_v44 = vld [vmem:[%s781_s5 + $0x58] sm:$0xff] }
  0x18   :  { %437 = vmatpush3.msra.mxu0 %v56_v20  ;;  %472 = vmatpush3.msra.mxu1 %v40_v21  ;;  %v252_v43 = vld [vmem:[%s781_s5 + $0x60] sm:$0xff]  ;;  %v250_v45 = vld [vmem:[%s781_s5 + $0x50] sm:$0xff]  ;;  %v249_v46 = vld [vmem:[%s781_s5 + $0x48] sm:$0xff] }
  0x19   :  { %438 = vmatprep.subr.mxu0 %v55_v22  ;;  %473 = vmatprep.subr.mxu1 %v39_v23  ;;  %v248_v47 = vld [vmem:[%s781_s5 + $0x40] sm:$0xff]  ;;  %v247_v48 = vld [vmem:[%s781_s5 + $0x38] sm:$0xff]  ;;  %v246_v49 = vld [vmem:[%s781_s5 + $0x30] sm:$0xff] }
  0x1a   :  { %439 = vmatpush3.msra.mxu0 %v55_v22  ;;  %474 = vmatpush3.msra.mxu1 %v39_v23  ;;  %v245_v50 = vld [vmem:[%s781_s5 + $0x28] sm:$0xff]  ;;  %v244_v51 = vld [vmem:[%s781_s5 + $0x20] sm:$0xff]  ;;  %v243_v52 = vld [vmem:[%s781_s5 + $0x18] sm:$0xff] }
  0x1b   :  { %440 = vmatprep.subr.mxu0 %v54_v24  ;;  %475 = vmatprep.subr.mxu1 %v38_v25  ;;  %v242_v53 = vld [vmem:[%s781_s5 + $0x10] sm:$0xff]  ;;  %v241_v54 = vld [vmem:[%s781_s5 + $0x8] sm:$0xff]  ;;  %v240_v55 = vld [vmem:[%s781_s5] sm:$0xff] }
  0x1c   :  { %441 = vmatpush3.msra.mxu0 %v54_v24  ;;  %476 = vmatpush3.msra.mxu1 %v38_v25  ;;  %v358_v58 = vld [vmem:[%s780_s4] ss:$0 sm:$0xff] }
  0x1d   :  { %442 = vmatprep.subr.mxu0 %v53_v26  ;;  %477 = vmatprep.subr.mxu1 %v37_v27  ;;  %v361_v11 = vld [vmem:[%s782_s6] ss:$0 sm:$0xff] }
  0x1e   :  { %443 = vmatpush3.msra.mxu0 %v53_v26  ;;  %478 = vmatpush3.msra.mxu1 %v37_v27 }
  0x1f   :  { %444 = vmatprep.subr.mxu0 %v52_v30  ;;  %479 = vmatprep.subr.mxu1 %v36_v31 }
  0x20   :  { %445 = vmatpush3.msra.mxu0 %v52_v30  ;;  %480 = vmatpush3.msra.mxu1 %v36_v31 }
  0x21   :  { %446 = vmatprep.subr.mxu0 %v51_v34  ;;  %481 = vmatprep.subr.mxu1 %v35_v35 }
  0x22   :  { %447 = vmatpush3.msra.mxu0 %v51_v34  ;;  %448 = vmatprep.mubr.f32.mxu0 %v31_v36 }
  0x23   :  { %482 = vmatpush3.msra.mxu1 %v35_v35  ;;  %483 = vmatprep.mubr.f32.mxu1 %v708_v37 }
  0x24   :  { %449 = vmatmul.mubr.f32.vlgmr.msra.gmra.mxu0 %v32_v38  ;;  %484 = vmatmul.mubr.f32.vlgmr.msra.gmra.mxu1 %v713_v39 }
  0x25   :  { %486 = vmatprep.subr.mxu0 %v255_v40 }
  0x26   :  { %487 = vmatpush3.msra.mxu0 %v255_v40 }
  0x27   :  { %488 = vmatprep.subr.mxu0 %v254_v41 }
  0x28   :  { %489 = vmatpush3.msra.mxu0 %v254_v41 }
  0x29   :  { %490 = vmatprep.subr.mxu0 %v253_v42 }
  0x2a   :  { %491 = vmatpush3.msra.mxu0 %v253_v42 }
  0x2b   :  { %492 = vmatprep.subr.mxu0 %v252_v43 }
  0x2c   :  { %493 = vmatpush3.msra.mxu0 %v252_v43 }
  0x2d   :  { %494 = vmatprep.subr.mxu0 %v251_v44 }
  0x2e   :  { %495 = vmatpush3.msra.mxu0 %v251_v44 }
  0x2f   :  { %496 = vmatprep.subr.mxu0 %v250_v45 }
  0x30   :  { %497 = vmatpush3.msra.mxu0 %v250_v45 }
  0x31   :  { %498 = vmatprep.subr.mxu0 %v249_v46 }
  0x32   :  { %499 = vmatpush3.msra.mxu0 %v249_v46 }
  0x33   :  { %500 = vmatprep.subr.mxu0 %v248_v47 }
  0x34   :  { %501 = vmatpush3.msra.mxu0 %v248_v47 }
  0x35   :  { %502 = vmatprep.subr.mxu0 %v247_v48 }
  0x36   :  { %503 = vmatpush3.msra.mxu0 %v247_v48 }
  0x37   :  { %504 = vmatprep.subr.mxu0 %v246_v49 }
  0x38   :  { %505 = vmatpush3.msra.mxu0 %v246_v49 }
  0x39   :  { %506 = vmatprep.subr.mxu0 %v245_v50 }
  0x3a   :  { %507 = vmatpush3.msra.mxu0 %v245_v50 }
  0x3b   :  { %508 = vmatprep.subr.mxu0 %v244_v51 }
  0x3c   :  { %509 = vmatpush3.msra.mxu0 %v244_v51 }
  0x3d   :  { %510 = vmatprep.subr.mxu0 %v243_v52 }
  0x3e   :  { %511 = vmatpush3.msra.mxu0 %v243_v52 }
  0x3f   :  { %512 = vmatprep.subr.mxu0 %v242_v53 }
  0x40   :  { %513 = vmatpush3.msra.mxu0 %v242_v53 }
  0x41   :  { %514 = vmatprep.subr.mxu0 %v241_v54 }
  0x42   :  { %515 = vmatpush3.msra.mxu0 %v241_v54 }
  0x43   :  { %516 = vmatprep.subr.mxu0 %v240_v55 }
  0x44   :  { %517 = vmatpush3.msra.mxu0 %v240_v55 }
  0xe4   :  { %v450_v56 = vpop.f32.mrf.mxu0  ;;  %v485_v57 = vpop.f32.mrf.mxu1 }
  0xe5   :  { %v214_v59 = vadd.f32 %v485_v57, %v450_v56 }
  0xe6   :  { %v133_v60 = vpop.f32.mrf.mxu0  ;;  %v208_v61 = vpop.f32.mrf.mxu1 }
  0xe7   :  { %v225_v62 = vadd.f32 %v358_v58, %v214_v59  ;;  %v209_v63 = vadd.f32 %v208_v61, %v133_v60 }
  0xe9   :  { %v360_v0 = vmul.f32 -1.442695, %v225_v62  ;;  %v224_v1 = vadd.f32 %v358_v58, %v209_v63 }
  0xeb   :  { %524 = vpow2.f32 %v360_v0  ;;  %v359_v2 = vmul.f32 -1.442695, %v224_v1 }
  0xed   :  { %526 = vpow2.f32 %v359_v2 }
  0xf8   :  { %v525_v3 = vpop.eup %524 }
  0xf9   :  { %v233_v4 = vadd.f32 1.0, %v525_v3 }
  0xfa   :  { %v527_v5 = vpop.eup %526 }
  0xfb   :  { %v232_v6 = vadd.f32 1.0, %v527_v5  ;;  %528 = vrcp.f32 %v233_v4 }
  0xfd   :  { %530 = vrcp.f32 %v232_v6 }
 0x108   :  { %v529_v7 = vpop.eup %528 }
 0x109   :  { %v239_v10 = vmul.f32 %v529_v7, %v225_v62 }
 0x10a   :  { %v531_v8 = vpop.eup %530 }
 0x10b   :  { %v238_v9 = vmul.f32 %v531_v8, %v224_v1 }
 0x10d   :  { %518 = vmatprep.mubr.f32.mxu0 %v238_v9 }
 0x10e   :  { %519 = vmatmul.mubr.f32.vlgmr.msra.gmra.mxu0 %v239_v10 }
 0x1ce   :  { %v520_v12 = vpop.f32.mrf.mxu0 }
 0x1cf   :  { %v335_v13 = vadd.f32 %v520_v12, %v361_v11 }
 0x1d0   :  { %v329_v14 = vpop.f32.mrf.mxu0 }
 0x1d1   :  { %v339_v15 = vadd.f32 %v335_v13, %v713_v39  ;;  %v330_v16 = vadd.f32 %v361_v11, %v329_v14 }
 0x1d3   :  { %341 = vst [vmem:[#allocation2 + $0x8] sm:$0xff] %v339_v15  ;;  %v338_v17 = vadd.f32 %v330_v16, %v708_v37 }
 0x1d5   :  { %340 = vst [vmem:[#allocation2] sm:$0xff] %v338_v17 }
 0x1d6   :  { %543 = shalt.err (!%p540_p4)
}
 0x1d7   :  { %s555_s6 = smov 128   ;;  %s556_s14 = smov 8  }
 0x1d8   :  { %353 = dma.vmem_to_hbm [thread:$0]  %s348_s12, 256, %s783_s7, [#allocation3], %s555_s6, %s555_s6, %s556_s14  }
 0x1d9   :  { %552 = dma.done.wait [#allocation3], 256  }
 0x1da   :  { %553 = vsyncadd [#allocation3], 4294967040 }
 0x1db   :  { %357 = vsyncpa [#allocation3], 1 }

// kernel: egcl_encode_forward.2
= control target key start
LH: loop header
LB: loop body
LE: loop exit
PB: predicated region body
PF: predicated region fallthrough
CT: control target
= control target key end

     0   :  { %s1997_s24 = smov 0   ;;  %s1999_s25 = smov 0   ;;  %s2342_s0 = inlined_call_operand.vmem [shape: f32[24,128], index: 0, kind: input, shape index: {}]   ;;  %s2343_s1 = inlined_call_operand.vmem [shape: f32[24,128], index: 1, kind: input, shape index: {}]   ;;  %s2344_s2 = inlined_call_operand.vmem [shape: s32[2,512], index: 2, kind: input, shape index: {}]   ;;  %s2345_s3 = inlined_call_operand.vmem [shape: f32[1,512], index: 3, kind: input, shape index: {}]   ;;  %s2346_s4 = inlined_call_operand.vmem [shape: f32[1,128], index: 4, kind: input, shape index: {}]   ;;  %s2347_s5 = inlined_call_operand.vmem [shape: f32[128,128], index: 5, kind: input, shape index: {}]   ;;  %s2348_s6 = inlined_call_operand.vmem [shape: f32[1,128], index: 6, kind: input, shape index: {}]   ;;  %s2349_s7 = inlined_call_operand.vmem [shape: f32[2,16,128], index: 7, kind: output, shape index: {}]  }
   0x1   :  { %s2001_s26 = smov 0   ;;  %s2003_s27 = smov 0  }
   0x2   :  { %s2005_s28 = smov 0  }
   0x3 LB: > { %s26_s29 = sadd.s32 1, %s1944_s26  ;;  %s29_s30 = sadd.s32 1, %s1948_s27  ;;  %s1952_s28 = sphi %s2005_s28, %s17_s28   ;;  %s1948_s27 = sphi %s2003_s27, %s2353_s27   ;;  %s1944_s26 = sphi %s2001_s26, %s2352_s26   ;;  %s1940_s25 = sphi %s1999_s25, %s2351_s25   ;;  %s1936_s24 = sphi %s1997_s24, %s2350_s24  }
   0x4   : > { %p27_p0 = scmp.ge.s32.totalorder %s26_s29, 2  ;;  %p1417_p1 = scmp.ge.s32.totalorder %s1952_s28, 1 }
   0x5   : > { %p272_p2 = scmp.lt.s32.totalorder %s1952_s28, 5 }
   0x6   : > { %s2355_s29 = smov (%p27_p0, %s26_s29), 0  ;;  %s2357_s30 = smov (!%p27_p0, %s29_s30), %s1948_s27 }
   0x7   : > { %p273_p3 = pnand %p1417_p1, %p272_p2  ;;  %p31_p4 = scmp.ge.s32.totalorder %s2357_s30, 2 }
   0x8   : > { %s1418_s8 = sshll.u32 (!%p273_p3), %s1940_s25, 1  ;;  %p325_p5 = scmp.lt.s32.totalorder (!%p273_p3), %s1940_s25, 1 }
   0x9   : > { %s2359_s30 = smov (%p31_p4, %s2357_s30), 0  ;;  %276 = sbr.rel (%p273_p3) target bundleno = 909 (0x38d), region = 48 }
   0xa   : > { %s311_s9 = sadd.s32 (!%p273_p3), %s1936_s24, %s1418_s8  ;;  %p1423_p7 = scmp.ne.s32.totalorder (!%p273_p3), %s1936_s24, 0 }
   0xb   : > { %p312_p6 = scmp.lt.s32.totalorder (!%p273_p3), %s311_s9, 3 }
   0xe   : > { %s2361_s25 = smov (!%p325_p5, %s1940_s25), 1  ;;  %s2363_s9 = smov (!%p312_p6, %s311_s9), 3 }
   0xf   : > { %s1503_s10 = sshll.u32 %s2361_s25, 4  ;;  %s1419_s11 = sshll.u32 %s2363_s9, 1 }
  0x10   : > { %s322_s14 = scalar_lea.vmem %s2345_s3, %s2363_s9  ;;  %s315_s17 = scalar_lea.vmem %s2344_s2, %s1419_s11 }
  0x11   : > { %s2040_s20 = scalar_lea.vmem %s2349_s7, %s1503_s10  ;;  %333 = sbr.rel (%p1423_p7) target bundleno = 24 (0x18), region = 52 }
  0x16   : > { %v1954_v0 = vmov 0.0  }
  0x17   : > { %334 = vst [vmem:[%s2040_s20] sm:$0xff] %v1954_v0  ;;  %335 = vst [vmem:[%s2040_s20 + $0x8] sm:$0xff] %v1954_v0 }
  0x18 PF: > { %v339_v1 = vlaneseq  ;;  %v386_v2 = vld [vmem:[%s2343_s1 + $0x10] sm:$0xff]  ;;  %v1429_v3 = vld [vmem:[%s315_s17 + $0x1] ss:$0 sm:$0xff]  ;;  %v2047_v4 = vld [vmem:[%s315_s17] ss:$0 sm:$0xff]  ;;  %v1955_v13 = vmov 0.0  }
  0x19   : > { %1592 = vmatprep.subr.mxu0 %v386_v2  ;;  %v383_v5 = vld [vmem:[%s2342_s0 + $0x10] sm:$0xff]  ;;  %v385_v7 = vld [vmem:[%s2343_s1 + $0x8] sm:$0xff]  ;;  %v384_v9 = vld [vmem:[%s2343_s1] sm:$0xff]  ;;  %vm419_vm7 = vcmask 195584  }
  0x1a   : > { %v2052_v6 = vshrl.u32 %v339_v1, 7  ;;  %1622 = vmatprep.subr.mxu1 %v383_v5  ;;  %1593 = vmatpush3.msra.mxu0 %v386_v2  ;;  %v382_v8 = vld [vmem:[%s2342_s0 + $0x8] sm:$0xff]  ;;  %v381_v12 = vld [vmem:[%s2342_s0] sm:$0xff]  ;;  %v988_v54 = vld [vmem:[%s2347_s5 + $0x78] sm:$0xff] }
  0x1b   : > { %1623 = vmatpush3.msra.mxu1 %v383_v5  ;;  %1594 = vmatprep.subr.mxu0 %v385_v7  ;;  %v1428_v18 = vld [vmem:[%s322_s14] ss:$0 sm:$0xff]  ;;  %v987_v55 = vld [vmem:[%s2347_s5 + $0x70] sm:$0xff]  ;;  %v986_v56 = vld [vmem:[%s2347_s5 + $0x68] sm:$0xff] }
  0x1c   : > { %vm372_vm0 = vcmp.eq.s32.totalorder %v2052_v6, %v1429_v3  ;;  %vm347_vm1 = vcmp.eq.s32.totalorder %v2052_v6, %v2047_v4  ;;  %v2067_v10 = vadd.s32 8, %v2052_v6  ;;  %v342_v11 = vadd.s32 16, %v2052_v6  ;;  %1624 = vmatprep.subr.mxu1 %v382_v8  ;;  %1595 = vmatpush3.msra.mxu0 %v385_v7  ;;  %v985_v57 = vld [vmem:[%s2347_s5 + $0x60] sm:$0xff]  ;;  %v984_v58 = vld [vmem:[%s2347_s5 + $0x58] sm:$0xff]  ;;  %v983_v59 = vld [vmem:[%s2347_s5 + $0x50] sm:$0xff] }
  0x1d   : > { %v1430_v14 = vsel %vm372_vm0, 1.0, %v1955_v13  ;;  %v1425_v15 = vsel %vm347_vm1, 1.0, %v1955_v13  ;;  %1625 = vmatpush3.msra.mxu1 %v382_v8  ;;  %1596 = vmatprep.subr.mxu0 %v384_v9  ;;  %v982_v60 = vld [vmem:[%s2347_s5 + $0x48] sm:$0xff]  ;;  %v981_v61 = vld [vmem:[%s2347_s5 + $0x40] sm:$0xff]  ;;  %v980_v62 = vld [vmem:[%s2347_s5 + $0x38] sm:$0xff] }
  0x1e   : > { %387 = vxpose.xlu0.b32.start [1/3] (short) %v1430_v14, 128  ;;  %613 = vxpose.xlu1.b32.start [1/3] (short) %v1425_v15, 128  ;;  %vm373_vm2 = vcmp.eq.s32.totalorder %v2067_v10, %v1429_v3  ;;  %vm348_vm3 = vcmp.eq.s32.totalorder %v2067_v10, %v2047_v4  ;;  %vm349_vm4 = vcmp.eq.s32.totalorder %v342_v11, %v2047_v4  ;;  %vm352_vm6 = vcmp.eq.s32.totalorder %v342_v11, 16  ;;  %v979_v63 = vld [vmem:[%s2347_s5 + $0x30] sm:$0xff]  ;;  %v978_v0 = vld [vmem:[%s2347_s5 + $0x28] sm:$0xff]  ;;  %v977_v1 = vld [vmem:[%s2347_s5 + $0x20] sm:$0xff] }
  0x1f   : > { %v1431_v16 = vsel %vm373_vm2, 1.0, %v1955_v13  ;;  %v1426_v17 = vsel %vm348_vm3, 1.0, %v1955_v13  ;;  %1626 = vmatprep.subr.mxu1 %v381_v12  ;;  %1597 = vmatpush3.msra.mxu0 %v384_v9  ;;  %vm374_vm5 = vcmp.eq.s32.totalorder %v342_v11, %v1429_v3  ;;  %v1427_v19 = vsel %vm349_vm4, 1.0, %v1955_v13  ;;  %v976_v2 = vld [vmem:[%s2347_s5 + $0x18] sm:$0xff]  ;;  %v975_v3 = vld [vmem:[%s2347_s5 + $0x10] sm:$0xff]  ;;  %v974_v5 = vld [vmem:[%s2347_s5 + $0x8] sm:$0xff] }
  0x20   : > { %1627 = vmatpush3.msra.mxu1 %v381_v12  ;;  %v1432_v20 = vsel %vm374_vm5, 1.0, %v1955_v13  ;;  %v367_v21 = vsel %vm352_vm6, %v1428_v18, %v1427_v19  ;;  %1652 = vmatprep.subr.mxu0 %v988_v54  ;;  %v973_v7 = vld [vmem:[%s2347_s5] sm:$0xff] }
  0x21   : > { %v2171_v11 = vld [vmem:[%s2346_s4] ss:$0 sm:$0xff] }
  0x22   : > { %388 = vxpose.xlu0.b32.cont [2/3] (short) %v1431_v16, 128  ;;  %614 = vxpose.xlu1.b32.cont [2/3] (short) %v1426_v17, 128 }
  0x26   : > { %389 = vxpose.xlu0.b32.end [3/3] (short) %v1432_v20, 128  ;;  %615 = vxpose.xlu1.b32.end [3/3] (short) %v367_v21, 128 }
  0x9a   : > { %v403_v22 = vpop.trf.xlu0  ;;  %v629_v23 = vpop.trf.xlu1 }
  0x9b   : > { %1598 = vmatprep.mubr.msk.f32.mxu0 %vm419_vm7, %v403_v22  ;;  %1628 = vmatprep.mubr.msk.f32.mxu1 %vm419_vm7, %v629_v23 }
  0x9e   : > { %v404_v24 = vpop.trf.xlu0  ;;  %v630_v25 = vpop.trf.xlu1 }
  0x9f   : > { %1599 = vmatmul.mubr.msk.f32.vlgmr.msra.gmra.mxu0 %vm419_vm7, %v404_v24  ;;  %1629 = vmatmul.mubr.msk.f32.vlgmr.msra.gmra.mxu1 %vm419_vm7, %v630_v25 }
  0xa0   : > { %1653 = vmatpush3.msra.mxu0 %v988_v54 }
  0xa1   : > { %1654 = vmatprep.subr.mxu0 %v987_v55 }
  0xa2   : > { %v405_v26 = vpop.trf.xlu0  ;;  %v631_v27 = vpop.trf.xlu1  ;;  %1655 = vmatpush3.msra.mxu0 %v987_v55 }
  0xa3   : > { %1601 = vmatprep.mubr.msk.f32.mxu0 %vm419_vm7, %v405_v26  ;;  %1631 = vmatprep.mubr.msk.f32.mxu1 %vm419_vm7, %v631_v27 }
  0xa4   : > { %1656 = vmatprep.subr.mxu0 %v986_v56 }
  0xa5   : > { %1657 = vmatpush3.msra.mxu0 %v986_v56 }
  0xa6   : > { %v406_v28 = vpop.trf.xlu0  ;;  %v632_v29 = vpop.trf.xlu1  ;;  %1658 = vmatprep.subr.mxu0 %v985_v57 }
  0xa7   : > { %1602 = vmatmul.mubr.msk.f32.gmra.mxu0 %vm419_vm7, %v406_v28  ;;  %1632 = vmatmul.mubr.msk.f32.gmra.mxu1 %vm419_vm7, %v632_v29 }
  0xa8   : > { %1659 = vmatpush3.msra.mxu0 %v985_v57 }
  0xa9   : > { %1660 = vmatprep.subr.mxu0 %v984_v58 }
  0xaa   : > { %v407_v30 = vpop.trf.xlu0  ;;  %v633_v31 = vpop.trf.xlu1  ;;  %1661 = vmatpush3.msra.mxu0 %v984_v58 }
  0xab   : > { %1604 = vmatprep.mubr.msk.f32.mxu0 %vm419_vm7, %v407_v30  ;;  %1634 = vmatprep.mubr.msk.f32.mxu1 %vm419_vm7, %v633_v31 }
  0xac   : > { %1662 = vmatprep.subr.mxu0 %v983_v59 }
  0xad   : > { %1663 = vmatpush3.msra.mxu0 %v983_v59 }
  0xae   : > { %v408_v32 = vpop.trf.xlu0  ;;  %v634_v33 = vpop.trf.xlu1  ;;  %1664 = vmatprep.subr.mxu0 %v982_v60 }
  0xaf   : > { %1605 = vmatmul.mubr.msk.f32.gmra.mxu0 %vm419_vm7, %v408_v32  ;;  %1635 = vmatmul.mubr.msk.f32.gmra.mxu1 %vm419_vm7, %v634_v33 }
  0xb0   : > { %1665 = vmatpush3.msra.mxu0 %v982_v60 }
  0xb1   : > { %1666 = vmatprep.subr.mxu0 %v981_v61 }
  0xb2   : > { %v409_v34 = vpop.trf.xlu0  ;;  %v635_v35 = vpop.trf.xlu1  ;;  %1667 = vmatpush3.msra.mxu0 %v981_v61 }
  0xb3   : > { %1607 = vmatprep.mubr.msk.f32.mxu0 %vm419_vm7, %v409_v34  ;;  %1637 = vmatprep.mubr.msk.f32.mxu1 %vm419_vm7, %v635_v35 }
  0xb4   : > { %1668 = vmatprep.subr.mxu0 %v980_v62 }
  0xb5   : > { %1669 = vmatpush3.msra.mxu0 %v980_v62 }
  0xb6   : > { %v410_v36 = vpop.trf.xlu0  ;;  %v636_v37 = vpop.trf.xlu1  ;;  %1670 = vmatprep.subr.mxu0 %v979_v63 }
  0xb7   : > { %1608 = vmatmul.mubr.msk.f32.gmra.mxu0 %vm419_vm7, %v410_v36  ;;  %1638 = vmatmul.mubr.msk.f32.gmra.mxu1 %vm419_vm7, %v636_v37 }
  0xb8   : > { %1671 = vmatpush3.msra.mxu0 %v979_v63 }
  0xb9   : > { %1672 = vmatprep.subr.mxu0 %v978_v0 }
  0xba   : > { %v411_v38 = vpop.trf.xlu0  ;;  %v637_v39 = vpop.trf.xlu1  ;;  %1673 = vmatpush3.msra.mxu0 %v978_v0 }
  0xbb   : > { %1610 = vmatprep.mubr.msk.f32.mxu0 %vm419_vm7, %v411_v38  ;;  %1640 = vmatprep.mubr.msk.f32.mxu1 %vm419_vm7, %v637_v39 }
  0xbc   : > { %1674 = vmatprep.subr.mxu0 %v977_v1 }
  0xbd   : > { %1675 = vmatpush3.msra.mxu0 %v977_v1 }
  0xbe   : > { %v412_v40 = vpop.trf.xlu0  ;;  %v638_v41 = vpop.trf.xlu1  ;;  %1676 = vmatprep.subr.mxu0 %v976_v2 }
  0xbf   : > { %1611 = vmatmul.mubr.msk.f32.gmra.mxu0 %vm419_vm7, %v412_v40  ;;  %1641 = vmatmul.mubr.msk.f32.gmra.mxu1 %vm419_vm7, %v638_v41 }
  0xc0   : > { %1677 = vmatpush3.msra.mxu0 %v976_v2 }
  0xc1   : > { %1678 = vmatprep.subr.mxu0 %v975_v3 }
  0xc2   : > { %v413_v42 = vpop.trf.xlu0  ;;  %v639_v43 = vpop.trf.xlu1  ;;  %1679 = vmatpush3.msra.mxu0 %v975_v3 }
  0xc3   : > { %1613 = vmatprep.mubr.msk.f32.mxu0 %vm419_vm7, %v413_v42  ;;  %1643 = vmatprep.mubr.msk.f32.mxu1 %vm419_vm7, %v639_v43 }
  0xc4   : > { %1680 = vmatprep.subr.mxu0 %v974_v5 }
  0xc5   : > { %1681 = vmatpush3.msra.mxu0 %v974_v5 }
  0xc6   : > { %v414_v44 = vpop.trf.xlu0  ;;  %v640_v45 = vpop.trf.xlu1  ;;  %1682 = vmatprep.subr.mxu0 %v973_v7 }
  0xc7   : > { %1614 = vmatmul.mubr.msk.f32.gmra.mxu0 %vm419_vm7, %v414_v44  ;;  %1644 = vmatmul.mubr.msk.f32.gmra.mxu1 %vm419_vm7, %v640_v45 }
  0xc8   : > { %1683 = vmatpush3.msra.mxu0 %v973_v7 }
  0xca   : > { %v415_v46 = vpop.trf.xlu0  ;;  %v641_v47 = vpop.trf.xlu1 }
  0xcb   : > { %1616 = vmatprep.mubr.msk.f32.mxu0 %vm419_vm7, %v415_v46  ;;  %1646 = vmatprep.mubr.msk.f32.mxu1 %vm419_vm7, %v641_v47 }
  0xce   : > { %v416_v48 = vpop.trf.xlu0  ;;  %v642_v49 = vpop.trf.xlu1 }
  0xcf   : > { %1617 = vmatmul.mubr.msk.f32.gmra.mxu0 %vm419_vm7, %v416_v48  ;;  %1647 = vmatmul.mubr.msk.f32.gmra.mxu1 %vm419_vm7, %v642_v49 }
  0xd2   : > { %v417_v50 = vpop.trf.xlu0  ;;  %v643_v51 = vpop.trf.xlu1 }
  0xd3   : > { %1619 = vmatprep.mubr.msk.f32.mxu0 %vm419_vm7, %v417_v50  ;;  %1649 = vmatprep.mubr.msk.f32.mxu1 %vm419_vm7, %v643_v51 }
  0xd6   : > { %v418_v52 = vpop.trf.xlu0  ;;  %v644_v53 = vpop.trf.xlu1 }
  0xd7   : > { %1620 = vmatmul.mubr.msk.f32.gmra.mxu0 %vm419_vm7, %v418_v52  ;;  %1650 = vmatmul.mubr.msk.f32.gmra.mxu1 %vm419_vm7, %v644_v53 }
 0x15f   : > { %v1600_v8 = vpop.f32.mrf.mxu0  ;;  %v1630_v9 = vpop.f32.mrf.mxu1 }
 0x160   : > { %v765_v12 = vadd.f32 %v1630_v9, %v1600_v8 }
 0x161   : > { %v534_v13 = vpop.f32.mrf.mxu0  ;;  %v759_v14 = vpop.f32.mrf.mxu1 }
 0x162   : > { %v2174_v15 = vadd.f32 %v2171_v11, %v765_v12  ;;  %v760_v16 = vadd.f32 %v759_v14, %v534_v13 }
 0x164   : > { %v1467_v17 = vmul.f32 -1.442695, %v2174_v15  ;;  %v2178_v18 = vadd.f32 %v2171_v11, %v760_v16 }
 0x166   : > { %1786 = vpow2.f32 %v1467_v17  ;;  %v1466_v19 = vmul.f32 -1.442695, %v2178_v18 }
 0x167   : > { %v1603_v20 = vpop.f32.mrf.mxu0  ;;  %v1633_v21 = vpop.f32.mrf.mxu1 }
 0x168   : > { %1788 = vpow2.f32 %v1466_v19  ;;  %v775_v22 = vadd.f32 %v1633_v21, %v1603_v20 }
 0x169   : > { %v544_v23 = vpop.f32.mrf.mxu0  ;;  %v769_v24 = vpop.f32.mrf.mxu1 }
 0x16a   : > { %v2182_v25 = vadd.f32 %v2171_v11, %v775_v22  ;;  %v770_v26 = vadd.f32 %v769_v24, %v544_v23 }
 0x16c   : > { %v1469_v27 = vmul.f32 -1.442695, %v2182_v25  ;;  %v2186_v28 = vadd.f32 %v2171_v11, %v770_v26 }
 0x16e   : > { %1790 = vpow2.f32 %v1469_v27  ;;  %v1468_v29 = vmul.f32 -1.442695, %v2186_v28 }
 0x16f   : > { %v1606_v30 = vpop.f32.mrf.mxu0  ;;  %v1636_v31 = vpop.f32.mrf.mxu1 }
 0x170   : > { %1792 = vpow2.f32 %v1468_v29  ;;  %v785_v32 = vadd.f32 %v1636_v31, %v1606_v30 }
 0x171   : > { %v554_v33 = vpop.f32.mrf.mxu0  ;;  %v779_v34 = vpop.f32.mrf.mxu1 }
 0x172   : > { %v2190_v35 = vadd.f32 %v2171_v11, %v785_v32  ;;  %v780_v36 = vadd.f32 %v779_v34, %v554_v33 }
 0x173   : > { %v1787_v37 = vpop.eup %1786 }
 0x174   : > { %v910_v38 = vadd.f32 1.0, %v1787_v37  ;;  %v1471_v39 = vmul.f32 -1.442695, %v2190_v35  ;;  %v2194_v40 = vadd.f32 %v2171_v11, %v780_v36 }
 0x175   : > { %v1789_v41 = vpop.eup %1788 }
 0x176   : > { %1794 = vrcp.f32 %v910_v38  ;;  %v909_v42 = vadd.f32 1.0, %v1789_v41  ;;  %v1470_v43 = vmul.f32 -1.442695, %v2194_v40 }
 0x177   : > { %1796 = vpow2.f32 %v1471_v39  ;;  %v1609_v44 = vpop.f32.mrf.mxu0  ;;  %v1639_v45 = vpop.f32.mrf.mxu1 }
 0x178   : > { %1798 = vrcp.f32 %v909_v42  ;;  %v795_v46 = vadd.f32 %v1639_v45, %v1609_v44 }
 0x179   : > { %1800 = vpow2.f32 %v1470_v43  ;;  %v564_v47 = vpop.f32.mrf.mxu0  ;;  %v789_v48 = vpop.f32.mrf.mxu1 }
 0x17a   : > { %v2198_v49 = vadd.f32 %v2171_v11, %v795_v46  ;;  %v790_v50 = vadd.f32 %v789_v48, %v564_v47 }
 0x17b   : > { %v1791_v51 = vpop.eup %1790 }
 0x17c   : > { %v912_v52 = vadd.f32 1.0, %v1791_v51  ;;  %v1473_v53 = vmul.f32 -1.442695, %v2198_v49  ;;  %v2202_v54 = vadd.f32 %v2171_v11, %v790_v50 }
 0x17d   : > { %v1793_v55 = vpop.eup %1792 }
 0x17e   : > { %1802 = vrcp.f32 %v912_v52  ;;  %v911_v56 = vadd.f32 1.0, %v1793_v55  ;;  %v1472_v57 = vmul.f32 -1.442695, %v2202_v54 }
 0x17f   : > { %1804 = vpow2.f32 %v1473_v53  ;;  %v1612_v58 = vpop.f32.mrf.mxu0  ;;  %v1642_v59 = vpop.f32.mrf.mxu1 }
 0x180   : > { %1806 = vrcp.f32 %v911_v56  ;;  %v805_v60 = vadd.f32 %v1642_v59, %v1612_v58 }
 0x181   : > { %1808 = vpow2.f32 %v1472_v57  ;;  %v574_v61 = vpop.f32.mrf.mxu0  ;;  %v799_v62 = vpop.f32.mrf.mxu1 }
 0x182   : > { %v2206_v63 = vadd.f32 %v2171_v11, %v805_v60  ;;  %v800_v0 = vadd.f32 %v799_v62, %v574_v61 }
 0x183   : > { %v1795_v1 = vpop.eup %1794 }
 0x184   : > { %v1797_v2 = vpop.eup %1796  ;;  %v1475_v3 = vmul.f32 -1.442695, %v2206_v63  ;;  %v2210_v5 = vadd.f32 %v2171_v11, %v800_v0  ;;  %v958_v14 = vmul.f32 %v1795_v1, %v2174_v15 }
 0x185   : > { %v1799_v7 = vpop.eup %1798  ;;  %v914_v8 = vadd.f32 1.0, %v1797_v2 }
 0x186   : > { %v1801_v9 = vpop.eup %1800  ;;  %1810 = vpow2.f32 %v1475_v3  ;;  %v1474_v12 = vmul.f32 -1.442695, %v2210_v5  ;;  %v957_v13 = vmul.f32 %v1799_v7, %v2178_v18 }
 0x187   : > { %1812 = vrcp.f32 %v914_v8  ;;  %v913_v16 = vadd.f32 1.0, %v1801_v9  ;;  %v1615_v17 = vpop.f32.mrf.mxu0  ;;  %v1645_v19 = vpop.f32.mrf.mxu1 }
 0x188   : > { %1814 = vpow2.f32 %v1474_v12  ;;  %v815_v20 = vadd.f32 %v1645_v19, %v1615_v17  ;;  %1684 = vmatprep.mubr.f32.mxu0 %v957_v13 }
 0x189   : > { %1816 = vrcp.f32 %v913_v16  ;;  %v584_v21 = vpop.f32.mrf.mxu0  ;;  %v809_v22 = vpop.f32.mrf.mxu1  ;;  %1685 = vmatmul.mubr.f32.vlgmr.msra.gmra.mxu0 %v958_v14 }
 0x18a   : > { %v2216_v23 = vadd.f32 %v2171_v11, %v815_v20  ;;  %v810_v24 = vadd.f32 %v809_v22, %v584_v21 }
 0x18b   : > { %v1803_v26 = vpop.eup %1802 }
 0x18c   : > { %v1805_v27 = vpop.eup %1804  ;;  %v1477_v18 = vmul.f32 -1.442695, %v2216_v23  ;;  %v2220_v15 = vadd.f32 %v2171_v11, %v810_v24  ;;  %v960_v38 = vmul.f32 %v1803_v26, %v2182_v25 }
 0x18d   : > { %v1807_v29 = vpop.eup %1806  ;;  %v916_v30 = vadd.f32 1.0, %v1805_v27 }
 0x18e   : > { %v1809_v31 = vpop.eup %1808  ;;  %1818 = vpow2.f32 %v1477_v18  ;;  %v1476_v32 = vmul.f32 -1.442695, %v2220_v15  ;;  %v959_v33 = vmul.f32 %v1807_v29, %v2186_v28 }
 0x18f   : > { %1820 = vrcp.f32 %v916_v30  ;;  %v915_v34 = vadd.f32 1.0, %v1809_v31  ;;  %v1618_v36 = vpop.f32.mrf.mxu0  ;;  %v1648_v37 = vpop.f32.mrf.mxu1 }
 0x190   : > { %1822 = vpow2.f32 %v1476_v32  ;;  %v825_v39 = vadd.f32 %v1648_v37, %v1618_v36  ;;  %1687 = vmatprep.mubr.f32.mxu0 %v959_v33 }
 0x191   : > { %1824 = vrcp.f32 %v915_v34  ;;  %v594_v41 = vpop.f32.mrf.mxu0  ;;  %v819_v42 = vpop.f32.mrf.mxu1  ;;  %1688 = vmatmul.mubr.f32.gmra.mxu0 %v960_v38 }
 0x192   : > { %v2226_v43 = vadd.f32 %v2171_v11, %v825_v39  ;;  %v820_v44 = vadd.f32 %v819_v42, %v594_v41 }
 0x193   : > { %v1811_v45 = vpop.eup %1810 }
 0x194   : > { %v1813_v46 = vpop.eup %1812  ;;  %v918_v28 = vadd.f32 1.0, %v1811_v45  ;;  %v1479_v47 = vmul.f32 -1.442695, %v2226_v43  ;;  %v2230_v48 = vadd.f32 %v2171_v11, %v820_v44 }
 0x195   : > { %v1815_v25 = vpop.eup %1814  ;;  %v962_v58 = vmul.f32 %v1813_v46, %v2190_v35 }
 0x196   : > { %v1817_v50 = vpop.eup %1816  ;;  %1826 = vrcp.f32 %v918_v28  ;;  %v917_v51 = vadd.f32 1.0, %v1815_v25  ;;  %v1478_v52 = vmul.f32 -1.442695, %v2230_v48 }
 0x197   : > { %1828 = vpow2.f32 %v1479_v47  ;;  %v1621_v53 = vpop.f32.mrf.mxu0  ;;  %v1651_v55 = vpop.f32.mrf.mxu1  ;;  %v961_v56 = vmul.f32 %v1817_v50, %v2194_v40  ;;  %v1482_v50 = vld [vmem:[%s2348_s6] ss:$0 sm:$0xff] }
 0x198   : > { %1830 = vrcp.f32 %v917_v51  ;;  %v835_v57 = vadd.f32 %v1651_v55, %v1621_v53 }
 0x199   : > { %1832 = vpow2.f32 %v1478_v52  ;;  %1690 = vmatprep.mubr.f32.mxu0 %v961_v56  ;;  %v604_v59 = vpop.f32.mrf.mxu0  ;;  %v829_v60 = vpop.f32.mrf.mxu1 }
 0x19a   : > { %v860_v61 = vadd.f32 %v2171_v11, %v835_v57  ;;  %v830_v62 = vadd.f32 %v829_v60, %v604_v59  ;;  %1691 = vmatmul.mubr.f32.gmra.mxu0 %v962_v58 }
 0x19b   : > { %v1819_v0 = vpop.eup %1818 }
 0x19c   : > { %v1821_v1 = vpop.eup %1820  ;;  %v920_v2 = vadd.f32 1.0, %v1819_v0  ;;  %v1481_v3 = vmul.f32 -1.442695, %v860_v61  ;;  %v859_v7 = vadd.f32 %v2171_v11, %v830_v62 }
 0x19d   : > { %v1823_v8 = vpop.eup %1822  ;;  %v964_v13 = vmul.f32 %v1821_v1, %v2198_v49 }
 0x19e   : > { %v1825_v40 = vpop.eup %1824  ;;  %1834 = vrcp.f32 %v920_v2  ;;  %v919_v9 = vadd.f32 1.0, %v1823_v8  ;;  %v1480_v12 = vmul.f32 -1.442695, %v859_v7 }
 0x19f   : > { %1836 = vpow2.f32 %v1481_v3  ;;  %v963_v35 = vmul.f32 %v1825_v40, %v2202_v54 }
 0x1a0   : > { %1838 = vrcp.f32 %v919_v9 }
 0x1a1   : > { %1840 = vpow2.f32 %v1480_v12  ;;  %1693 = vmatprep.mubr.f32.mxu0 %v963_v35 }
 0x1a2   : > { %1694 = vmatmul.mubr.f32.gmra.mxu0 %v964_v13 }
 0x1a3   : > { %v1827_v14 = vpop.eup %1826 }
 0x1a4   : > { %v1829_v16 = vpop.eup %1828  ;;  %v966_v22 = vmul.f32 %v1827_v14, %v2206_v63 }
 0x1a5   : > { %v1831_v17 = vpop.eup %1830  ;;  %v922_v19 = vadd.f32 1.0, %v1829_v16 }
 0x1a6   : > { %v1833_v20 = vpop.eup %1832  ;;  %v965_v11 = vmul.f32 %v1831_v17, %v2210_v5 }
 0x1a7   : > { %v921_v21 = vadd.f32 1.0, %v1833_v20  ;;  %1842 = vrcp.f32 %v922_v19 }
 0x1a8   : > { %1696 = vmatprep.mubr.f32.mxu0 %v965_v11 }
 0x1a9   : > { %1844 = vrcp.f32 %v921_v21  ;;  %1697 = vmatmul.mubr.f32.gmra.mxu0 %v966_v22 }
 0x1ab   : > { %v1835_v54 = vpop.eup %1834 }
 0x1ac   : > { %v1837_v24 = vpop.eup %1836  ;;  %v968_v30 = vmul.f32 %v1835_v54, %v2216_v23 }
 0x1ad   : > { %v1839_v49 = vpop.eup %1838  ;;  %v924_v26 = vadd.f32 1.0, %v1837_v24 }
 0x1ae   : > { %v1841_v27 = vpop.eup %1840  ;;  %v967_v18 = vmul.f32 %v1839_v49, %v2220_v15  ;;  %v1956_v15 = vmov 1.0  }
 0x1af   : > { %v923_v29 = vadd.f32 1.0, %v1841_v27  ;;  %1846 = vrcp.f32 %v924_v26  ;;  %1740 = vmatprep.mubr.msk.f32.mxu1 %vm347_vm1, %v1956_v15 }
 0x1b0   : > { %1699 = vmatprep.mubr.f32.mxu0 %v967_v18 }
 0x1b1   : > { %1848 = vrcp.f32 %v923_v29  ;;  %1700 = vmatmul.mubr.f32.gmra.mxu0 %v968_v30 }
 0x1b4   : > { %v1843_v5 = vpop.eup %1842 }
 0x1b5   : > { %v970_v32 = vmul.f32 %v1843_v5, %v2226_v43 }
 0x1b6   : > { %v1845_v63 = vpop.eup %1844 }
 0x1b7   : > { %v969_v31 = vmul.f32 %v1845_v63, %v2230_v48 }
 0x1b9   : > { %1702 = vmatprep.mubr.f32.mxu0 %v969_v31 }
 0x1ba   : > { %1703 = vmatmul.mubr.f32.gmra.mxu0 %v970_v32 }
 0x1bc   : > { %v1847_v33 = vpop.eup %1846 }
 0x1bd   : > { %v972_v37 = vmul.f32 %v1847_v33, %v860_v61 }
 0x1be   : > { %v1849_v34 = vpop.eup %1848 }
 0x1bf   : > { %v971_v36 = vmul.f32 %v1849_v34, %v859_v7 }
 0x1c1   : > { %1705 = vmatprep.mubr.f32.mxu0 %v971_v36 }
 0x1c2   : > { %1706 = vmatmul.mubr.f32.gmra.mxu0 %v972_v37 }
 0x249   : > { %v1686_v23 = vpop.f32.mrf.mxu0 }
 0x24a   : > { %v2295_v49 = vadd.f32 %v1686_v23, %v1482_v50 }
 0x24b   : > { %v2249_v38 = vpop.f32.mrf.mxu0 }
 0x24c   : > { %v2298_v30 = vadd.f32 %v1482_v50, %v2249_v38  ;;  %v1484_v33 = vmul.f32 -1.442695, %v2295_v49 }
 0x24e   : > { %v1483_v37 = vmul.f32 -1.442695, %v2298_v30 }
 0x251   : > { %v1689_v39 = vpop.f32.mrf.mxu0 }
 0x252   : > { %v2282_v35 = vadd.f32 %v1689_v39, %v1482_v50 }
 0x253   : > { %v1072_v41 = vpop.f32.mrf.mxu0 }
 0x254   : > { %v1486_v19 = vmul.f32 -1.442695, %v2282_v35  ;;  %v2292_v21 = vadd.f32 %v1482_v50, %v1072_v41 }
 0x256   : > { %v1485_v5 = vmul.f32 -1.442695, %v2292_v21 }
 0x25a   : > { %v1692_v42 = vpop.f32.mrf.mxu0 }
 0x25b   : > { %v2284_v13 = vadd.f32 %v1692_v42, %v1482_v50 }
 0x25c   : > { %v1082_v43 = vpop.f32.mrf.mxu0 }
 0x25d   : > { %v2287_v16 = vadd.f32 %v1482_v50, %v1082_v43  ;;  %v1488_v11 = vmul.f32 -1.442695, %v2284_v13 }
 0x25f   : > { %v1487_v22 = vmul.f32 -1.442695, %v2287_v16 }
 0x262   : > { %v1695_v44 = vpop.f32.mrf.mxu0 }
 0x263   : > { %v2276_v8 = vadd.f32 %v1695_v44, %v1482_v50 }
 0x264   : > { %v1092_v45 = vpop.f32.mrf.mxu0 }
 0x265   : > { %v2279_v9 = vadd.f32 %v1482_v50, %v1092_v45  ;;  %v1490_v14 = vmul.f32 -1.442695, %v2276_v8 }
 0x267   : > { %v1489_v17 = vmul.f32 -1.442695, %v2279_v9 }
 0x269   : > { %v1698_v46 = vpop.f32.mrf.mxu0 }
 0x26a   : > { %v2267_v62 = vadd.f32 %v1698_v46, %v1482_v50 }
 0x26b   : > { %v1102_v28 = vpop.f32.mrf.mxu0 }
 0x26c   : > { %v2272_v2 = vadd.f32 %v1482_v50, %v1102_v28  ;;  %v1492_v40 = vmul.f32 -1.442695, %v2267_v62 }
 0x26e   : > { %v1491_v12 = vmul.f32 -1.442695, %v2272_v2 }
 0x271   : > { %v1701_v47 = vpop.f32.mrf.mxu0 }
 0x272   : > { %v2258_v53 = vadd.f32 %v1701_v47, %v1482_v50 }
 0x273   : > { %v1112_v48 = vpop.f32.mrf.mxu0 }
 0x274   : > { %v2262_v58 = vadd.f32 %v1482_v50, %v1112_v48  ;;  %v1494_v60 = vmul.f32 -1.442695, %v2258_v53 }
 0x276   : > { %v1493_v3 = vmul.f32 -1.442695, %v2262_v58 }
 0x27a   : > { %v1704_v25 = vpop.f32.mrf.mxu0 }
 0x27b   : > { %v2254_v6 = vadd.f32 %v1704_v25, %v1482_v50 }
 0x27c   : > { %v1122_v51 = vpop.f32.mrf.mxu0 }
 0x27d   : > { %v2256_v52 = vadd.f32 %v1482_v50, %v1122_v51  ;;  %v1496_v55 = vmul.f32 -1.442695, %v2254_v6 }
 0x27f   : > { %v1495_v56 = vmul.f32 -1.442695, %v2256_v52  ;;  %1850 = vpow2.f32 %v1496_v55 }
 0x281   : > { %1852 = vpow2.f32 %v1495_v56 }
 0x282   : > { %v1707_v57 = vpop.f32.mrf.mxu0 }
 0x283   : > { %v2264_v59 = vadd.f32 %v1707_v57, %v1482_v50 }
 0x284   : > { %v1132_v61 = vpop.f32.mrf.mxu0 }
 0x285   : > { %v1498_v0 = vmul.f32 -1.442695, %v2264_v59  ;;  %v2270_v1 = vadd.f32 %v1482_v50, %v1132_v61 }
 0x287   : > { %1854 = vpow2.f32 %v1498_v0  ;;  %v1497_v7 = vmul.f32 -1.442695, %v2270_v1 }
 0x288   : > { %1856 = vpow2.f32 %v1494_v60 }
 0x289   : > { %1858 = vpow2.f32 %v1497_v7 }
 0x28a   : > { %1860 = vpow2.f32 %v1493_v3 }
 0x28b   : > { %1862 = vpow2.f32 %v1492_v40 }
 0x28c   : > { %1864 = vpow2.f32 %v1491_v12  ;;  %v1851_v20 = vpop.eup %1850 }
 0x28d   : > { %1866 = vpow2.f32 %v1490_v14  ;;  %v1202_v26 = vadd.f32 1.0, %v1851_v20 }
 0x28e   : > { %v1853_v54 = vpop.eup %1852  ;;  %1868 = vpow2.f32 %v1489_v17 }
 0x28f   : > { %1870 = vpow2.f32 %v1486_v19  ;;  %v1201_v63 = vadd.f32 1.0, %v1853_v54 }
 0x290   : > { %1872 = vpow2.f32 %v1488_v11 }
 0x291   : > { %1874 = vpow2.f32 %v1487_v22 }
 0x294   : > { %v1855_v24 = vpop.eup %1854 }
 0x295   : > { %v1857_v27 = vpop.eup %1856  ;;  %v1204_v18 = vadd.f32 1.0, %v1855_v24 }
 0x296   : > { %v1859_v29 = vpop.eup %1858  ;;  %v1200_v34 = vadd.f32 1.0, %v1857_v27 }
 0x297   : > { %1876 = vrcp.f32 %v1204_v18  ;;  %v1203_v31 = vadd.f32 1.0, %v1859_v29  ;;  %v1861_v32 = vpop.eup %1860 }
 0x298   : > { %1878 = vrcp.f32 %v1202_v26  ;;  %v1863_v36 = vpop.eup %1862  ;;  %v1199_v23 = vadd.f32 1.0, %v1861_v32  ;;  %v1328_v32 = vld [vmem:[%s2040_s20] sm:$0xff] }
 0x299   : > { %1880 = vrcp.f32 %v1203_v31  ;;  %v1865_v38 = vpop.eup %1864  ;;  %v1198_v39 = vadd.f32 1.0, %v1863_v36 }
 0x29a   : > { %1882 = vpow2.f32 %v1485_v5  ;;  %v1867_v41 = vpop.eup %1866  ;;  %v1197_v42 = vadd.f32 1.0, %v1865_v38 }
 0x29b   : > { %1884 = vrcp.f32 %v1201_v63  ;;  %v1869_v43 = vpop.eup %1868  ;;  %v1196_v45 = vadd.f32 1.0, %v1867_v41 }
 0x29c   : > { %1886 = vpow2.f32 %v1484_v33  ;;  %v1871_v44 = vpop.eup %1870  ;;  %v1195_v47 = vadd.f32 1.0, %v1869_v43 }
 0x29d   : > { %1888 = vrcp.f32 %v1200_v34  ;;  %v1873_v46 = vpop.eup %1872  ;;  %v1192_v3 = vadd.f32 1.0, %v1871_v44 }
 0x29e   : > { %1890 = vpow2.f32 %v1483_v37  ;;  %v1875_v28 = vpop.eup %1874  ;;  %v1194_v50 = vadd.f32 1.0, %v1873_v46 }
 0x29f   : > { %1892 = vrcp.f32 %v1199_v23  ;;  %v1193_v57 = vadd.f32 1.0, %v1875_v28 }
 0x2a0   : > { %1894 = vrcp.f32 %v1198_v39 }
 0x2a1   : > { %1896 = vrcp.f32 %v1197_v42 }
 0x2a2   : > { %1898 = vrcp.f32 %v1196_v45 }
 0x2a3   : > { %1900 = vrcp.f32 %v1195_v47 }
 0x2a4   : > { %v1877_v48 = vpop.eup %1876  ;;  %1902 = vrcp.f32 %v1194_v50 }
 0x2a5   : > { %v1879_v25 = vpop.eup %1878  ;;  %v1252_v51 = vmul.f32 %v1877_v48, %v2264_v59  ;;  %1904 = vrcp.f32 %v1193_v57 }
 0x2a6   : > { %v1881_v55 = vpop.eup %1880  ;;  %v1250_v7 = vmul.f32 %v1879_v25, %v2254_v6  ;;  %1906 = vrcp.f32 %v1192_v3 }
 0x2a7   : > { %v1883_v56 = vpop.eup %1882  ;;  %v1251_v60 = vmul.f32 %v1881_v55, %v2270_v1  ;;  %1708 = vmatprep.subr.mxu1 %v1252_v51 }
 0x2a8   : > { %v1885_v61 = vpop.eup %1884  ;;  %1709 = vmatpush3.msra.mxu1 %v1252_v51  ;;  %v1191_v14 = vadd.f32 1.0, %v1883_v56 }
 0x2a9   : > { %v1887_v0 = vpop.eup %1886  ;;  %1710 = vmatprep.subr.mxu1 %v1251_v60  ;;  %v1249_v59 = vmul.f32 %v1885_v61, %v2256_v52 }
 0x2aa   : > { %v1889_v40 = vpop.eup %1888  ;;  %1711 = vmatpush3.msra.mxu1 %v1251_v60  ;;  %v1190_v1 = vadd.f32 1.0, %v1887_v0  ;;  %1908 = vrcp.f32 %v1191_v14 }
 0x2ab   : > { %v1891_v12 = vpop.eup %1890  ;;  %1712 = vmatprep.subr.mxu1 %v1250_v7  ;;  %v1248_v19 = vmul.f32 %v1889_v40, %v2258_v53 }
 0x2ac   : > { %v1893_v17 = vpop.eup %1892  ;;  %1713 = vmatpush3.msra.mxu1 %v1250_v7  ;;  %v1189_v11 = vadd.f32 1.0, %v1891_v12  ;;  %1910 = vrcp.f32 %v1190_v1 }
 0x2ad   : > { %1714 = vmatprep.subr.mxu1 %v1249_v59  ;;  %v1895_v20 = vpop.eup %1894  ;;  %v1247_v6 = vmul.f32 %v1893_v17, %v2262_v58 }
 0x2ae   : > { %1715 = vmatpush3.msra.mxu1 %v1249_v59  ;;  %v1897_v22 = vpop.eup %1896  ;;  %v1246_v52 = vmul.f32 %v1895_v20, %v2267_v62  ;;  %1912 = vrcp.f32 %v1189_v11 }
 0x2af   : > { %1716 = vmatprep.subr.mxu1 %v1248_v19  ;;  %v1899_v54 = vpop.eup %1898  ;;  %v1245_v24 = vmul.f32 %v1897_v22, %v2272_v2 }
 0x2b0   : > { %1717 = vmatpush3.msra.mxu1 %v1248_v19  ;;  %v1901_v53 = vpop.eup %1900  ;;  %v1244_v26 = vmul.f32 %v1899_v54, %v2276_v8 }
 0x2b1   : > { %1718 = vmatprep.subr.mxu1 %v1247_v6  ;;  %v1903_v27 = vpop.eup %1902  ;;  %v1243_v58 = vmul.f32 %v1901_v53, %v2279_v9 }
 0x2b2   : > { %1719 = vmatpush3.msra.mxu1 %v1247_v6  ;;  %v1905_v18 = vpop.eup %1904  ;;  %v1242_v62 = vmul.f32 %v1903_v27, %v2284_v13 }
 0x2b3   : > { %1720 = vmatprep.subr.mxu1 %v1246_v52  ;;  %v1907_v29 = vpop.eup %1906  ;;  %v1241_v2 = vmul.f32 %v1905_v18, %v2287_v16 }
 0x2b4   : > { %1721 = vmatpush3.msra.mxu1 %v1246_v52  ;;  %v1240_v8 = vmul.f32 %v1907_v29, %v2282_v35  ;;  %v1329_v35 = vld [vmem:[%s2040_s20 + $0x8] sm:$0xff] }
 0x2b5   : > { %1722 = vmatprep.subr.mxu1 %v1245_v24 }
 0x2b6   : > { %1723 = vmatpush3.msra.mxu1 %v1245_v24 }
 0x2b7   : > { %1724 = vmatprep.subr.mxu1 %v1244_v26  ;;  %v1909_v5 = vpop.eup %1908 }
 0x2b8   : > { %1725 = vmatpush3.msra.mxu1 %v1244_v26  ;;  %v1239_v9 = vmul.f32 %v1909_v5, %v2292_v21 }
 0x2b9   : > { %1726 = vmatprep.subr.mxu1 %v1243_v58  ;;  %v1911_v63 = vpop.eup %1910 }
 0x2ba   : > { %1727 = vmatpush3.msra.mxu1 %v1243_v58  ;;  %v1238_v13 = vmul.f32 %v1911_v63, %v2295_v49 }
 0x2bb   : > { %1728 = vmatprep.subr.mxu1 %v1242_v62  ;;  %v1913_v31 = vpop.eup %1912 }
 0x2bc   : > { %1729 = vmatpush3.msra.mxu1 %v1242_v62  ;;  %v1237_v16 = vmul.f32 %v1913_v31, %v2298_v30 }
 0x2bd   : > { %1730 = vmatprep.subr.mxu1 %v1241_v2 }
 0x2be   : > { %1731 = vmatpush3.msra.mxu1 %v1241_v2 }
 0x2bf   : > { %1732 = vmatprep.subr.mxu1 %v1240_v8 }
 0x2c0   : > { %1733 = vmatpush3.msra.mxu1 %v1240_v8 }
 0x2c1   : > { %1734 = vmatprep.subr.mxu1 %v1239_v9 }
 0x2c2   : > { %1735 = vmatpush3.msra.mxu1 %v1239_v9 }
 0x2c3   : > { %1736 = vmatprep.subr.mxu1 %v1238_v13 }
 0x2c4   : > { %1737 = vmatpush3.msra.mxu1 %v1238_v13 }
 0x2c5   : > { %1738 = vmatprep.subr.mxu1 %v1237_v16 }
 0x2c6   : > { %1739 = vmatpush3.msra.mxu1 %v1237_v16 }
 0x2c7   : > { %1741 = vmatmul.mubr.msk.f32.vlgmr.msra.gmra.mxu1 %vm348_vm3, %v1956_v15 }
 0x387   : > { %v1742_v21 = vpop.f32.mrf.mxu1 }
 0x388   : > { %v1331_v33 = vadd.f32 %v1742_v21, %v1329_v35 }
 0x389   : > { %v1319_v34 = vpop.f32.mrf.mxu1 }
 0x38a   : > { %1333 = vst [vmem:[%s2040_s20 + $0x8] sm:$0xff] %v1331_v33  ;;  %v1330_v49 = vadd.f32 %v1328_v32, %v1319_v34 }
 0x38c   : > { %1332 = vst [vmem:[%s2040_s20] sm:$0xff] %v1330_v49 }
 0x38d PF: > { %s17_s28 = sadd.s32 1, %s1952_s28   ;;  %s2350_s24 = smov %s1944_s26 }
 0x38e   : > { %p14_p8 = scmp.ge.s32.totalorder %s17_s28, 6   ;;  %s2351_s25 = smov %s1948_s27 }
 0x38f   : > { %s2352_s26 = smov %s2355_s29  ;;  %s2353_s27 = smov %s2359_s30 }
 0x390   :  { %16 = sbr.rel (!%p14_p8) target bundleno = 3 (0x3), region = 85 }

// kernel: egcl_encode_forward.2
= control target key start
LH: loop header
LB: loop body
LE: loop exit
PB: predicated region body
PF: predicated region fallthrough
CT: control target
= control target key end

     0   :  { %s1997_s24 = smov 0   ;;  %s1999_s25 = smov 0   ;;  %s2342_s0 = inlined_call_operand.vmem [shape: f32[24,128], index: 0, kind: input, shape index: {}]   ;;  %s2343_s1 = inlined_call_operand.vmem [shape: f32[24,128], index: 1, kind: input, shape index: {}]   ;;  %s2344_s2 = inlined_call_operand.vmem [shape: s32[2,512], index: 2, kind: input, shape index: {}]   ;;  %s2345_s3 = inlined_call_operand.vmem [shape: f32[1,512], index: 3, kind: input, shape index: {}]   ;;  %s2346_s4 = inlined_call_operand.vmem [shape: f32[1,128], index: 4, kind: input, shape index: {}]   ;;  %s2347_s5 = inlined_call_operand.vmem [shape: f32[128,128], index: 5, kind: input, shape index: {}]   ;;  %s2348_s6 = inlined_call_operand.vmem [shape: f32[1,128], index: 6, kind: input, shape index: {}]   ;;  %s2349_s7 = inlined_call_operand.vmem [shape: f32[2,16,128], index: 7, kind: output, shape index: {}]  }
   0x1   :  { %s2001_s26 = smov 0   ;;  %s2003_s27 = smov 0  }
   0x2   :  { %s2005_s28 = smov 0  }
   0x3 LB: > { %s26_s29 = sadd.s32 1, %s1944_s26  ;;  %s29_s30 = sadd.s32 1, %s1948_s27  ;;  %s1952_s28 = sphi %s2005_s28, %s17_s28   ;;  %s1948_s27 = sphi %s2003_s27, %s2353_s27   ;;  %s1944_s26 = sphi %s2001_s26, %s2352_s26   ;;  %s1940_s25 = sphi %s1999_s25, %s2351_s25   ;;  %s1936_s24 = sphi %s1997_s24, %s2350_s24  }
   0x4   : > { %p27_p0 = scmp.ge.s32.totalorder %s26_s29, 2  ;;  %p1417_p1 = scmp.ge.s32.totalorder %s1952_s28, 1 }
   0x5   : > { %p272_p2 = scmp.lt.s32.totalorder %s1952_s28, 5 }
   0x6   : > { %s2355_s29 = smov (%p27_p0, %s26_s29), 0  ;;  %s2357_s30 = smov (!%p27_p0, %s29_s30), %s1948_s27 }
   0x7   : > { %p273_p3 = pnand %p1417_p1, %p272_p2  ;;  %p31_p4 = scmp.ge.s32.totalorder %s2357_s30, 2 }
   0x8   : > { %s1418_s8 = sshll.u32 (!%p273_p3), %s1940_s25, 1  ;;  %p325_p5 = scmp.lt.s32.totalorder (!%p273_p3), %s1940_s25, 1 }
   0x9   : > { %s2359_s30 = smov (%p31_p4, %s2357_s30), 0  ;;  %276 = sbr.rel (%p273_p3) target bundleno = 909 (0x38d), region = 48 }
   0xa   : > { %s311_s9 = sadd.s32 (!%p273_p3), %s1936_s24, %s1418_s8  ;;  %p1423_p7 = scmp.ne.s32.totalorder (!%p273_p3), %s1936_s24, 0 }
   0xb   : > { %p312_p6 = scmp.lt.s32.totalorder (!%p273_p3), %s311_s9, 3 }
   0xe   : > { %s2361_s25 = smov (!%p325_p5, %s1940_s25), 1  ;;  %s2363_s9 = smov (!%p312_p6, %s311_s9), 3 }
   0xf   : > { %s1503_s10 = sshll.u32 %s2361_s25, 4  ;;  %s1419_s11 = sshll.u32 %s2363_s9, 1 }
  0x10   : > { %s322_s14 = scalar_lea.vmem %s2345_s3, %s2363_s9  ;;  %s315_s17 = scalar_lea.vmem %s2344_s2, %s1419_s11 }
  0x11   : > { %s2040_s20 = scalar_lea.vmem %s2349_s7, %s1503_s10  ;;  %333 = sbr.rel (%p1423_p7) target bundleno = 24 (0x18), region = 52 }
  0x16   : > { %v1954_v0 = vmov 0.0  }
  0x17   : > { %334 = vst [vmem:[%s2040_s20] sm:$0xff] %v1954_v0  ;;  %335 = vst [vmem:[%s2040_s20 + $0x8] sm:$0xff] %v1954_v0 }
  0x18 PF: > { %v339_v1 = vlaneseq  ;;  %v386_v2 = vld [vmem:[%s2343_s1 + $0x10] sm:$0xff]  ;;  %v1429_v3 = vld [vmem:[%s315_s17 + $0x1] ss:$0 sm:$0xff]  ;;  %v2047_v4 = vld [vmem:[%s315_s17] ss:$0 sm:$0xff]  ;;  %v1955_v13 = vmov 0.0  }
  0x19   : > { %1592 = vmatprep.subr.mxu0 %v386_v2  ;;  %v383_v5 = vld [vmem:[%s2342_s0 + $0x10] sm:$0xff]  ;;  %v385_v7 = vld [vmem:[%s2343_s1 + $0x8] sm:$0xff]  ;;  %v384_v9 = vld [vmem:[%s2343_s1] sm:$0xff]  ;;  %vm419_vm7 = vcmask 195584  }
  0x1a   : > { %v2052_v6 = vshrl.u32 %v339_v1, 7  ;;  %1622 = vmatprep.subr.mxu1 %v383_v5  ;;  %1593 = vmatpush3.msra.mxu0 %v386_v2  ;;  %v382_v8 = vld [vmem:[%s2342_s0 + $0x8] sm:$0xff]  ;;  %v381_v12 = vld [vmem:[%s2342_s0] sm:$0xff]  ;;  %v988_v54 = vld [vmem:[%s2347_s5 + $0x78] sm:$0xff] }
  0x1b   : > { %1623 = vmatpush3.msra.mxu1 %v383_v5  ;;  %1594 = vmatprep.subr.mxu0 %v385_v7  ;;  %v1428_v18 = vld [vmem:[%s322_s14] ss:$0 sm:$0xff]  ;;  %v987_v55 = vld [vmem:[%s2347_s5 + $0x70] sm:$0xff]  ;;  %v986_v56 = vld [vmem:[%s2347_s5 + $0x68] sm:$0xff] }
  0x1c   : > { %vm372_vm0 = vcmp.eq.s32.totalorder %v2052_v6, %v1429_v3  ;;  %vm347_vm1 = vcmp.eq.s32.totalorder %v2052_v6, %v2047_v4  ;;  %v2067_v10 = vadd.s32 8, %v2052_v6  ;;  %v342_v11 = vadd.s32 16, %v2052_v6  ;;  %1624 = vmatprep.subr.mxu1 %v382_v8  ;;  %1595 = vmatpush3.msra.mxu0 %v385_v7  ;;  %v985_v57 = vld [vmem:[%s2347_s5 + $0x60] sm:$0xff]  ;;  %v984_v58 = vld [vmem:[%s2347_s5 + $0x58] sm:$0xff]  ;;  %v983_v59 = vld [vmem:[%s2347_s5 + $0x50] sm:$0xff] }
  0x1d   : > { %v1430_v14 = vsel %vm372_vm0, 1.0, %v1955_v13  ;;  %v1425_v15 = vsel %vm347_vm1, 1.0, %v1955_v13  ;;  %1625 = vmatpush3.msra.mxu1 %v382_v8  ;;  %1596 = vmatprep.subr.mxu0 %v384_v9  ;;  %v982_v60 = vld [vmem:[%s2347_s5 + $0x48] sm:$0xff]  ;;  %v981_v61 = vld [vmem:[%s2347_s5 + $0x40] sm:$0xff]  ;;  %v980_v62 = vld [vmem:[%s2347_s5 + $0x38] sm:$0xff] }
  0x1e   : > { %387 = vxpose.xlu0.b32.start [1/3] (short) %v1430_v14, 128  ;;  %613 = vxpose.xlu1.b32.start [1/3] (short) %v1425_v15, 128  ;;  %vm373_vm2 = vcmp.eq.s32.totalorder %v2067_v10, %v1429_v3  ;;  %vm348_vm3 = vcmp.eq.s32.totalorder %v2067_v10, %v2047_v4  ;;  %vm349_vm4 = vcmp.eq.s32.totalorder %v342_v11, %v2047_v4  ;;  %vm352_vm6 = vcmp.eq.s32.totalorder %v342_v11, 16  ;;  %v979_v63 = vld [vmem:[%s2347_s5 + $0x30] sm:$0xff]  ;;  %v978_v0 = vld [vmem:[%s2347_s5 + $0x28] sm:$0xff]  ;;  %v977_v1 = vld [vmem:[%s2347_s5 + $0x20] sm:$0xff] }
  0x1f   : > { %v1431_v16 = vsel %vm373_vm2, 1.0, %v1955_v13  ;;  %v1426_v17 = vsel %vm348_vm3, 1.0, %v1955_v13  ;;  %1626 = vmatprep.subr.mxu1 %v381_v12  ;;  %1597 = vmatpush3.msra.mxu0 %v384_v9  ;;  %vm374_vm5 = vcmp.eq.s32.totalorder %v342_v11, %v1429_v3  ;;  %v1427_v19 = vsel %vm349_vm4, 1.0, %v1955_v13  ;;  %v976_v2 = vld [vmem:[%s2347_s5 + $0x18] sm:$0xff]  ;;  %v975_v3 = vld [vmem:[%s2347_s5 + $0x10] sm:$0xff]  ;;  %v974_v5 = vld [vmem:[%s2347_s5 + $0x8] sm:$0xff] }
  0x20   : > { %1627 = vmatpush3.msra.mxu1 %v381_v12  ;;  %v1432_v20 = vsel %vm374_vm5, 1.0, %v1955_v13  ;;  %v367_v21 = vsel %vm352_vm6, %v1428_v18, %v1427_v19  ;;  %1652 = vmatprep.subr.mxu0 %v988_v54  ;;  %v973_v7 = vld [vmem:[%s2347_s5] sm:$0xff] }
  0x21   : > { %v2171_v11 = vld [vmem:[%s2346_s4] ss:$0 sm:$0xff] }
  0x22   : > { %388 = vxpose.xlu0.b32.cont [2/3] (short) %v1431_v16, 128  ;;  %614 = vxpose.xlu1.b32.cont [2/3] (short) %v1426_v17, 128 }
  0x26   : > { %389 = vxpose.xlu0.b32.end [3/3] (short) %v1432_v20, 128  ;;  %615 = vxpose.xlu1.b32.end [3/3] (short) %v367_v21, 128 }
  0x9a   : > { %v403_v22 = vpop.trf.xlu0  ;;  %v629_v23 = vpop.trf.xlu1 }
  0x9b   : > { %1598 = vmatprep.mubr.msk.f32.mxu0 %vm419_vm7, %v403_v22  ;;  %1628 = vmatprep.mubr.msk.f32.mxu1 %vm419_vm7, %v629_v23 }
  0x9e   : > { %v404_v24 = vpop.trf.xlu0  ;;  %v630_v25 = vpop.trf.xlu1 }
  0x9f   : > { %1599 = vmatmul.mubr.msk.f32.vlgmr.msra.gmra.mxu0 %vm419_vm7, %v404_v24  ;;  %1629 = vmatmul.mubr.msk.f32.vlgmr.msra.gmra.mxu1 %vm419_vm7, %v630_v25 }
  0xa0   : > { %1653 = vmatpush3.msra.mxu0 %v988_v54 }
  0xa1   : > { %1654 = vmatprep.subr.mxu0 %v987_v55 }
  0xa2   : > { %v405_v26 = vpop.trf.xlu0  ;;  %v631_v27 = vpop.trf.xlu1  ;;  %1655 = vmatpush3.msra.mxu0 %v987_v55 }
  0xa3   : > { %1601 = vmatprep.mubr.msk.f32.mxu0 %vm419_vm7, %v405_v26  ;;  %1631 = vmatprep.mubr.msk.f32.mxu1 %vm419_vm7, %v631_v27 }
  0xa4   : > { %1656 = vmatprep.subr.mxu0 %v986_v56 }
  0xa5   : > { %1657 = vmatpush3.msra.mxu0 %v986_v56 }
  0xa6   : > { %v406_v28 = vpop.trf.xlu0  ;;  %v632_v29 = vpop.trf.xlu1  ;;  %1658 = vmatprep.subr.mxu0 %v985_v57 }
  0xa7   : > { %1602 = vmatmul.mubr.msk.f32.gmra.mxu0 %vm419_vm7, %v406_v28  ;;  %1632 = vmatmul.mubr.msk.f32.gmra.mxu1 %vm419_vm7, %v632_v29 }
  0xa8   : > { %1659 = vmatpush3.msra.mxu0 %v985_v57 }
  0xa9   : > { %1660 = vmatprep.subr.mxu0 %v984_v58 }
  0xaa   : > { %v407_v30 = vpop.trf.xlu0  ;;  %v633_v31 = vpop.trf.xlu1  ;;  %1661 = vmatpush3.msra.mxu0 %v984_v58 }
  0xab   : > { %1604 = vmatprep.mubr.msk.f32.mxu0 %vm419_vm7, %v407_v30  ;;  %1634 = vmatprep.mubr.msk.f32.mxu1 %vm419_vm7, %v633_v31 }
  0xac   : > { %1662 = vmatprep.subr.mxu0 %v983_v59 }
  0xad   : > { %1663 = vmatpush3.msra.mxu0 %v983_v59 }
  0xae   : > { %v408_v32 = vpop.trf.xlu0  ;;  %v634_v33 = vpop.trf.xlu1  ;;  %1664 = vmatprep.subr.mxu0 %v982_v60 }
  0xaf   : > { %1605 = vmatmul.mubr.msk.f32.gmra.mxu0 %vm419_vm7, %v408_v32  ;;  %1635 = vmatmul.mubr.msk.f32.gmra.mxu1 %vm419_vm7, %v634_v33 }
  0xb0   : > { %1665 = vmatpush3.msra.mxu0 %v982_v60 }
  0xb1   : > { %1666 = vmatprep.subr.mxu0 %v981_v61 }
  0xb2   : > { %v409_v34 = vpop.trf.xlu0  ;;  %v635_v35 = vpop.trf.xlu1  ;;  %1667 = vmatpush3.msra.mxu0 %v981_v61 }
  0xb3   : > { %1607 = vmatprep.mubr.msk.f32.mxu0 %vm419_vm7, %v409_v34  ;;  %1637 = vmatprep.mubr.msk.f32.mxu1 %vm419_vm7, %v635_v35 }
  0xb4   : > { %1668 = vmatprep.subr.mxu0 %v980_v62 }
  0xb5   : > { %1669 = vmatpush3.msra.mxu0 %v980_v62 }
  0xb6   : > { %v410_v36 = vpop.trf.xlu0  ;;  %v636_v37 = vpop.trf.xlu1  ;;  %1670 = vmatprep.subr.mxu0 %v979_v63 }
  0xb7   : > { %1608 = vmatmul.mubr.msk.f32.gmra.mxu0 %vm419_vm7, %v410_v36  ;;  %1638 = vmatmul.mubr.msk.f32.gmra.mxu1 %vm419_vm7, %v636_v37 }
  0xb8   : > { %1671 = vmatpush3.msra.mxu0 %v979_v63 }
  0xb9   : > { %1672 = vmatprep.subr.mxu0 %v978_v0 }
  0xba   : > { %v411_v38 = vpop.trf.xlu0  ;;  %v637_v39 = vpop.trf.xlu1  ;;  %1673 = vmatpush3.msra.mxu0 %v978_v0 }
  0xbb   : > { %1610 = vmatprep.mubr.msk.f32.mxu0 %vm419_vm7, %v411_v38  ;;  %1640 = vmatprep.mubr.msk.f32.mxu1 %vm419_vm7, %v637_v39 }
  0xbc   : > { %1674 = vmatprep.subr.mxu0 %v977_v1 }
  0xbd   : > { %1675 = vmatpush3.msra.mxu0 %v977_v1 }
  0xbe   : > { %v412_v40 = vpop.trf.xlu0  ;;  %v638_v41 = vpop.trf.xlu1  ;;  %1676 = vmatprep.subr.mxu0 %v976_v2 }
  0xbf   : > { %1611 = vmatmul.mubr.msk.f32.gmra.mxu0 %vm419_vm7, %v412_v40  ;;  %1641 = vmatmul.mubr.msk.f32.gmra.mxu1 %vm419_vm7, %v638_v41 }
  0xc0   : > { %1677 = vmatpush3.msra.mxu0 %v976_v2 }
  0xc1   : > { %1678 = vmatprep.subr.mxu0 %v975_v3 }
  0xc2   : > { %v413_v42 = vpop.trf.xlu0  ;;  %v639_v43 = vpop.trf.xlu1  ;;  %1679 = vmatpush3.msra.mxu0 %v975_v3 }
  0xc3   : > { %1613 = vmatprep.mubr.msk.f32.mxu0 %vm419_vm7, %v413_v42  ;;  %1643 = vmatprep.mubr.msk.f32.mxu1 %vm419_vm7, %v639_v43 }
  0xc4   : > { %1680 = vmatprep.subr.mxu0 %v974_v5 }
  0xc5   : > { %1681 = vmatpush3.msra.mxu0 %v974_v5 }
  0xc6   : > { %v414_v44 = vpop.trf.xlu0  ;;  %v640_v45 = vpop.trf.xlu1  ;;  %1682 = vmatprep.subr.mxu0 %v973_v7 }
  0xc7   : > { %1614 = vmatmul.mubr.msk.f32.gmra.mxu0 %vm419_vm7, %v414_v44  ;;  %1644 = vmatmul.mubr.msk.f32.gmra.mxu1 %vm419_vm7, %v640_v45 }
  0xc8   : > { %1683 = vmatpush3.msra.mxu0 %v973_v7 }
  0xca   : > { %v415_v46 = vpop.trf.xlu0  ;;  %v641_v47 = vpop.trf.xlu1 }
  0xcb   : > { %1616 = vmatprep.mubr.msk.f32.mxu0 %vm419_vm7, %v415_v46  ;;  %1646 = vmatprep.mubr.msk.f32.mxu1 %vm419_vm7, %v641_v47 }
  0xce   : > { %v416_v48 = vpop.trf.xlu0  ;;  %v642_v49 = vpop.trf.xlu1 }
  0xcf   : > { %1617 = vmatmul.mubr.msk.f32.gmra.mxu0 %vm419_vm7, %v416_v48  ;;  %1647 = vmatmul.mubr.msk.f32.gmra.mxu1 %vm419_vm7, %v642_v49 }
  0xd2   : > { %v417_v50 = vpop.trf.xlu0  ;;  %v643_v51 = vpop.trf.xlu1 }
  0xd3   : > { %1619 = vmatprep.mubr.msk.f32.mxu0 %vm419_vm7, %v417_v50  ;;  %1649 = vmatprep.mubr.msk.f32.mxu1 %vm419_vm7, %v643_v51 }
  0xd6   : > { %v418_v52 = vpop.trf.xlu0  ;;  %v644_v53 = vpop.trf.xlu1 }
  0xd7   : > { %1620 = vmatmul.mubr.msk.f32.gmra.mxu0 %vm419_vm7, %v418_v52  ;;  %1650 = vmatmul.mubr.msk.f32.gmra.mxu1 %vm419_vm7, %v644_v53 }
 0x15f   : > { %v1600_v8 = vpop.f32.mrf.mxu0  ;;  %v1630_v9 = vpop.f32.mrf.mxu1 }
 0x160   : > { %v765_v12 = vadd.f32 %v1630_v9, %v1600_v8 }
 0x161   : > { %v534_v13 = vpop.f32.mrf.mxu0  ;;  %v759_v14 = vpop.f32.mrf.mxu1 }
 0x162   : > { %v2174_v15 = vadd.f32 %v2171_v11, %v765_v12  ;;  %v760_v16 = vadd.f32 %v759_v14, %v534_v13 }
 0x164   : > { %v1467_v17 = vmul.f32 -1.442695, %v2174_v15  ;;  %v2178_v18 = vadd.f32 %v2171_v11, %v760_v16 }
 0x166   : > { %1786 = vpow2.f32 %v1467_v17  ;;  %v1466_v19 = vmul.f32 -1.442695, %v2178_v18 }
 0x167   : > { %v1603_v20 = vpop.f32.mrf.mxu0  ;;  %v1633_v21 = vpop.f32.mrf.mxu1 }
 0x168   : > { %1788 = vpow2.f32 %v1466_v19  ;;  %v775_v22 = vadd.f32 %v1633_v21, %v1603_v20 }
 0x169   : > { %v544_v23 = vpop.f32.mrf.mxu0  ;;  %v769_v24 = vpop.f32.mrf.mxu1 }
 0x16a   : > { %v2182_v25 = vadd.f32 %v2171_v11, %v775_v22  ;;  %v770_v26 = vadd.f32 %v769_v24, %v544_v23 }
 0x16c   : > { %v1469_v27 = vmul.f32 -1.442695, %v2182_v25  ;;  %v2186_v28 = vadd.f32 %v2171_v11, %v770_v26 }
 0x16e   : > { %1790 = vpow2.f32 %v1469_v27  ;;  %v1468_v29 = vmul.f32 -1.442695, %v2186_v28 }
 0x16f   : > { %v1606_v30 = vpop.f32.mrf.mxu0  ;;  %v1636_v31 = vpop.f32.mrf.mxu1 }
 0x170   : > { %1792 = vpow2.f32 %v1468_v29  ;;  %v785_v32 = vadd.f32 %v1636_v31, %v1606_v30 }
 0x171   : > { %v554_v33 = vpop.f32.mrf.mxu0  ;;  %v779_v34 = vpop.f32.mrf.mxu1 }
 0x172   : > { %v2190_v35 = vadd.f32 %v2171_v11, %v785_v32  ;;  %v780_v36 = vadd.f32 %v779_v34, %v554_v33 }
 0x173   : > { %v1787_v37 = vpop.eup %1786 }
 0x174   : > { %v910_v38 = vadd.f32 1.0, %v1787_v37  ;;  %v1471_v39 = vmul.f32 -1.442695, %v2190_v35  ;;  %v2194_v40 = vadd.f32 %v2171_v11, %v780_v36 }
 0x175   : > { %v1789_v41 = vpop.eup %1788 }
 0x176   : > { %1794 = vrcp.f32 %v910_v38  ;;  %v909_v42 = vadd.f32 1.0, %v1789_v41  ;;  %v1470_v43 = vmul.f32 -1.442695, %v2194_v40 }
 0x177   : > { %1796 = vpow2.f32 %v1471_v39  ;;  %v1609_v44 = vpop.f32.mrf.mxu0  ;;  %v1639_v45 = vpop.f32.mrf.mxu1 }
 0x178   : > { %1798 = vrcp.f32 %v909_v42  ;;  %v795_v46 = vadd.f32 %v1639_v45, %v1609_v44 }
 0x179   : > { %1800 = vpow2.f32 %v1470_v43  ;;  %v564_v47 = vpop.f32.mrf.mxu0  ;;  %v789_v48 = vpop.f32.mrf.mxu1 }
 0x17a   : > { %v2198_v49 = vadd.f32 %v2171_v11, %v795_v46  ;;  %v790_v50 = vadd.f32 %v789_v48, %v564_v47 }
 0x17b   : > { %v1791_v51 = vpop.eup %1790 }
 0x17c   : > { %v912_v52 = vadd.f32 1.0, %v1791_v51  ;;  %v1473_v53 = vmul.f32 -1.442695, %v2198_v49  ;;  %v2202_v54 = vadd.f32 %v2171_v11, %v790_v50 }
 0x17d   : > { %v1793_v55 = vpop.eup %1792 }
 0x17e   : > { %1802 = vrcp.f32 %v912_v52  ;;  %v911_v56 = vadd.f32 1.0, %v1793_v55  ;;  %v1472_v57 = vmul.f32 -1.442695, %v2202_v54 }
 0x17f   : > { %1804 = vpow2.f32 %v1473_v53  ;;  %v1612_v58 = vpop.f32.mrf.mxu0  ;;  %v1642_v59 = vpop.f32.mrf.mxu1 }
 0x180   : > { %1806 = vrcp.f32 %v911_v56  ;;  %v805_v60 = vadd.f32 %v1642_v59, %v1612_v58 }
 0x181   : > { %1808 = vpow2.f32 %v1472_v57  ;;  %v574_v61 = vpop.f32.mrf.mxu0  ;;  %v799_v62 = vpop.f32.mrf.mxu1 }
 0x182   : > { %v2206_v63 = vadd.f32 %v2171_v11, %v805_v60  ;;  %v800_v0 = vadd.f32 %v799_v62, %v574_v61 }
 0x183   : > { %v1795_v1 = vpop.eup %1794 }
 0x184   : > { %v1797_v2 = vpop.eup %1796  ;;  %v1475_v3 = vmul.f32 -1.442695, %v2206_v63  ;;  %v2210_v5 = vadd.f32 %v2171_v11, %v800_v0  ;;  %v958_v14 = vmul.f32 %v1795_v1, %v2174_v15 }
 0x185   : > { %v1799_v7 = vpop.eup %1798  ;;  %v914_v8 = vadd.f32 1.0, %v1797_v2 }
 0x186   : > { %v1801_v9 = vpop.eup %1800  ;;  %1810 = vpow2.f32 %v1475_v3  ;;  %v1474_v12 = vmul.f32 -1.442695, %v2210_v5  ;;  %v957_v13 = vmul.f32 %v1799_v7, %v2178_v18 }
 0x187   : > { %1812 = vrcp.f32 %v914_v8  ;;  %v913_v16 = vadd.f32 1.0, %v1801_v9  ;;  %v1615_v17 = vpop.f32.mrf.mxu0  ;;  %v1645_v19 = vpop.f32.mrf.mxu1 }
 0x188   : > { %1814 = vpow2.f32 %v1474_v12  ;;  %v815_v20 = vadd.f32 %v1645_v19, %v1615_v17  ;;  %1684 = vmatprep.mubr.f32.mxu0 %v957_v13 }
 0x189   : > { %1816 = vrcp.f32 %v913_v16  ;;  %v584_v21 = vpop.f32.mrf.mxu0  ;;  %v809_v22 = vpop.f32.mrf.mxu1  ;;  %1685 = vmatmul.mubr.f32.vlgmr.msra.gmra.mxu0 %v958_v14 }
 0x18a   : > { %v2216_v23 = vadd.f32 %v2171_v11, %v815_v20  ;;  %v810_v24 = vadd.f32 %v809_v22, %v584_v21 }
 0x18b   : > { %v1803_v26 = vpop.eup %1802 }
 0x18c   : > { %v1805_v27 = vpop.eup %1804  ;;  %v1477_v18 = vmul.f32 -1.442695, %v2216_v23  ;;  %v2220_v15 = vadd.f32 %v2171_v11, %v810_v24  ;;  %v960_v38 = vmul.f32 %v1803_v26, %v2182_v25 }
 0x18d   : > { %v1807_v29 = vpop.eup %1806  ;;  %v916_v30 = vadd.f32 1.0, %v1805_v27 }
 0x18e   : > { %v1809_v31 = vpop.eup %1808  ;;  %1818 = vpow2.f32 %v1477_v18  ;;  %v1476_v32 = vmul.f32 -1.442695, %v2220_v15  ;;  %v959_v33 = vmul.f32 %v1807_v29, %v2186_v28 }
 0x18f   : > { %1820 = vrcp.f32 %v916_v30  ;;  %v915_v34 = vadd.f32 1.0, %v1809_v31  ;;  %v1618_v36 = vpop.f32.mrf.mxu0  ;;  %v1648_v37 = vpop.f32.mrf.mxu1 }
 0x190   : > { %1822 = vpow2.f32 %v1476_v32  ;;  %v825_v39 = vadd.f32 %v1648_v37, %v1618_v36  ;;  %1687 = vmatprep.mubr.f32.mxu0 %v959_v33 }
 0x191   : > { %1824 = vrcp.f32 %v915_v34  ;;  %v594_v41 = vpop.f32.mrf.mxu0  ;;  %v819_v42 = vpop.f32.mrf.mxu1  ;;  %1688 = vmatmul.mubr.f32.gmra.mxu0 %v960_v38 }
 0x192   : > { %v2226_v43 = vadd.f32 %v2171_v11, %v825_v39  ;;  %v820_v44 = vadd.f32 %v819_v42, %v594_v41 }
 0x193   : > { %v1811_v45 = vpop.eup %1810 }
 0x194   : > { %v1813_v46 = vpop.eup %1812  ;;  %v918_v28 = vadd.f32 1.0, %v1811_v45  ;;  %v1479_v47 = vmul.f32 -1.442695, %v2226_v43  ;;  %v2230_v48 = vadd.f32 %v2171_v11, %v820_v44 }
 0x195   : > { %v1815_v25 = vpop.eup %1814  ;;  %v962_v58 = vmul.f32 %v1813_v46, %v2190_v35 }
 0x196   : > { %v1817_v50 = vpop.eup %1816  ;;  %1826 = vrcp.f32 %v918_v28  ;;  %v917_v51 = vadd.f32 1.0, %v1815_v25  ;;  %v1478_v52 = vmul.f32 -1.442695, %v2230_v48 }
 0x197   : > { %1828 = vpow2.f32 %v1479_v47  ;;  %v1621_v53 = vpop.f32.mrf.mxu0  ;;  %v1651_v55 = vpop.f32.mrf.mxu1  ;;  %v961_v56 = vmul.f32 %v1817_v50, %v2194_v40  ;;  %v1482_v50 = vld [vmem:[%s2348_s6] ss:$0 sm:$0xff] }
 0x198   : > { %1830 = vrcp.f32 %v917_v51  ;;  %v835_v57 = vadd.f32 %v1651_v55, %v1621_v53 }
 0x199   : > { %1832 = vpow2.f32 %v1478_v52  ;;  %1690 = vmatprep.mubr.f32.mxu0 %v961_v56  ;;  %v604_v59 = vpop.f32.mrf.mxu0  ;;  %v829_v60 = vpop.f32.mrf.mxu1 }
 0x19a   : > { %v860_v61 = vadd.f32 %v2171_v11, %v835_v57  ;;  %v830_v62 = vadd.f32 %v829_v60, %v604_v59  ;;  %1691 = vmatmul.mubr.f32.gmra.mxu0 %v962_v58 }
 0x19b   : > { %v1819_v0 = vpop.eup %1818 }
 0x19c   : > { %v1821_v1 = vpop.eup %1820  ;;  %v920_v2 = vadd.f32 1.0, %v1819_v0  ;;  %v1481_v3 = vmul.f32 -1.442695, %v860_v61  ;;  %v859_v7 = vadd.f32 %v2171_v11, %v830_v62 }
 0x19d   : > { %v1823_v8 = vpop.eup %1822  ;;  %v964_v13 = vmul.f32 %v1821_v1, %v2198_v49 }
 0x19e   : > { %v1825_v40 = vpop.eup %1824  ;;  %1834 = vrcp.f32 %v920_v2  ;;  %v919_v9 = vadd.f32 1.0, %v1823_v8  ;;  %v1480_v12 = vmul.f32 -1.442695, %v859_v7 }
 0x19f   : > { %1836 = vpow2.f32 %v1481_v3  ;;  %v963_v35 = vmul.f32 %v1825_v40, %v2202_v54 }
 0x1a0   : > { %1838 = vrcp.f32 %v919_v9 }
 0x1a1   : > { %1840 = vpow2.f32 %v1480_v12  ;;  %1693 = vmatprep.mubr.f32.mxu0 %v963_v35 }
 0x1a2   : > { %1694 = vmatmul.mubr.f32.gmra.mxu0 %v964_v13 }
 0x1a3   : > { %v1827_v14 = vpop.eup %1826 }
 0x1a4   : > { %v1829_v16 = vpop.eup %1828  ;;  %v966_v22 = vmul.f32 %v1827_v14, %v2206_v63 }
 0x1a5   : > { %v1831_v17 = vpop.eup %1830  ;;  %v922_v19 = vadd.f32 1.0, %v1829_v16 }
 0x1a6   : > { %v1833_v20 = vpop.eup %1832  ;;  %v965_v11 = vmul.f32 %v1831_v17, %v2210_v5 }
 0x1a7   : > { %v921_v21 = vadd.f32 1.0, %v1833_v20  ;;  %1842 = vrcp.f32 %v922_v19 }
 0x1a8   : > { %1696 = vmatprep.mubr.f32.mxu0 %v965_v11 }
 0x1a9   : > { %1844 = vrcp.f32 %v921_v21  ;;  %1697 = vmatmul.mubr.f32.gmra.mxu0 %v966_v22 }
 0x1ab   : > { %v1835_v54 = vpop.eup %1834 }
 0x1ac   : > { %v1837_v24 = vpop.eup %1836  ;;  %v968_v30 = vmul.f32 %v1835_v54, %v2216_v23 }
 0x1ad   : > { %v1839_v49 = vpop.eup %1838  ;;  %v924_v26 = vadd.f32 1.0, %v1837_v24 }
 0x1ae   : > { %v1841_v27 = vpop.eup %1840  ;;  %v967_v18 = vmul.f32 %v1839_v49, %v2220_v15  ;;  %v1956_v15 = vmov 1.0  }
 0x1af   : > { %v923_v29 = vadd.f32 1.0, %v1841_v27  ;;  %1846 = vrcp.f32 %v924_v26  ;;  %1740 = vmatprep.mubr.msk.f32.mxu1 %vm347_vm1, %v1956_v15 }
 0x1b0   : > { %1699 = vmatprep.mubr.f32.mxu0 %v967_v18 }
 0x1b1   : > { %1848 = vrcp.f32 %v923_v29  ;;  %1700 = vmatmul.mubr.f32.gmra.mxu0 %v968_v30 }
 0x1b4   : > { %v1843_v5 = vpop.eup %1842 }
 0x1b5   : > { %v970_v32 = vmul.f32 %v1843_v5, %v2226_v43 }
 0x1b6   : > { %v1845_v63 = vpop.eup %1844 }
 0x1b7   : > { %v969_v31 = vmul.f32 %v1845_v63, %v2230_v48 }
 0x1b9   : > { %1702 = vmatprep.mubr.f32.mxu0 %v969_v31 }
 0x1ba   : > { %1703 = vmatmul.mubr.f32.gmra.mxu0 %v970_v32 }
 0x1bc   : > { %v1847_v33 = vpop.eup %1846 }
 0x1bd   : > { %v972_v37 = vmul.f32 %v1847_v33, %v860_v61 }
 0x1be   : > { %v1849_v34 = vpop.eup %1848 }
 0x1bf   : > { %v971_v36 = vmul.f32 %v1849_v34, %v859_v7 }
 0x1c1   : > { %1705 = vmatprep.mubr.f32.mxu0 %v971_v36 }
 0x1c2   : > { %1706 = vmatmul.mubr.f32.gmra.mxu0 %v972_v37 }
 0x249   : > { %v1686_v23 = vpop.f32.mrf.mxu0 }
 0x24a   : > { %v2295_v49 = vadd.f32 %v1686_v23, %v1482_v50 }
 0x24b   : > { %v2249_v38 = vpop.f32.mrf.mxu0 }
 0x24c   : > { %v2298_v30 = vadd.f32 %v1482_v50, %v2249_v38  ;;  %v1484_v33 = vmul.f32 -1.442695, %v2295_v49 }
 0x24e   : > { %v1483_v37 = vmul.f32 -1.442695, %v2298_v30 }
 0x251   : > { %v1689_v39 = vpop.f32.mrf.mxu0 }
 0x252   : > { %v2282_v35 = vadd.f32 %v1689_v39, %v1482_v50 }
 0x253   : > { %v1072_v41 = vpop.f32.mrf.mxu0 }
 0x254   : > { %v1486_v19 = vmul.f32 -1.442695, %v2282_v35  ;;  %v2292_v21 = vadd.f32 %v1482_v50, %v1072_v41 }
 0x256   : > { %v1485_v5 = vmul.f32 -1.442695, %v2292_v21 }
 0x25a   : > { %v1692_v42 = vpop.f32.mrf.mxu0 }
 0x25b   : > { %v2284_v13 = vadd.f32 %v1692_v42, %v1482_v50 }
 0x25c   : > { %v1082_v43 = vpop.f32.mrf.mxu0 }
 0x25d   : > { %v2287_v16 = vadd.f32 %v1482_v50, %v1082_v43  ;;  %v1488_v11 = vmul.f32 -1.442695, %v2284_v13 }
 0x25f   : > { %v1487_v22 = vmul.f32 -1.442695, %v2287_v16 }
 0x262   : > { %v1695_v44 = vpop.f32.mrf.mxu0 }
 0x263   : > { %v2276_v8 = vadd.f32 %v1695_v44, %v1482_v50 }
 0x264   : > { %v1092_v45 = vpop.f32.mrf.mxu0 }
 0x265   : > { %v2279_v9 = vadd.f32 %v1482_v50, %v1092_v45  ;;  %v1490_v14 = vmul.f32 -1.442695, %v2276_v8 }
 0x267   : > { %v1489_v17 = vmul.f32 -1.442695, %v2279_v9 }
 0x269   : > { %v1698_v46 = vpop.f32.mrf.mxu0 }
 0x26a   : > { %v2267_v62 = vadd.f32 %v1698_v46, %v1482_v50 }
 0x26b   : > { %v1102_v28 = vpop.f32.mrf.mxu0 }
 0x26c   : > { %v2272_v2 = vadd.f32 %v1482_v50, %v1102_v28  ;;  %v1492_v40 = vmul.f32 -1.442695, %v2267_v62 }
 0x26e   : > { %v1491_v12 = vmul.f32 -1.442695, %v2272_v2 }
 0x271   : > { %v1701_v47 = vpop.f32.mrf.mxu0 }
 0x272   : > { %v2258_v53 = vadd.f32 %v1701_v47, %v1482_v50 }
 0x273   : > { %v1112_v48 = vpop.f32.mrf.mxu0 }
 0x274   : > { %v2262_v58 = vadd.f32 %v1482_v50, %v1112_v48  ;;  %v1494_v60 = vmul.f32 -1.442695, %v2258_v53 }
 0x276   : > { %v1493_v3 = vmul.f32 -1.442695, %v2262_v58 }
 0x27a   : > { %v1704_v25 = vpop.f32.mrf.mxu0 }
 0x27b   : > { %v2254_v6 = vadd.f32 %v1704_v25, %v1482_v50 }
 0x27c   : > { %v1122_v51 = vpop.f32.mrf.mxu0 }
 0x27d   : > { %v2256_v52 = vadd.f32 %v1482_v50, %v1122_v51  ;;  %v1496_v55 = vmul.f32 -1.442695, %v2254_v6 }
 0x27f   : > { %v1495_v56 = vmul.f32 -1.442695, %v2256_v52  ;;  %1850 = vpow2.f32 %v1496_v55 }
 0x281   : > { %1852 = vpow2.f32 %v1495_v56 }
 0x282   : > { %v1707_v57 = vpop.f32.mrf.mxu0 }
 0x283   : > { %v2264_v59 = vadd.f32 %v1707_v57, %v1482_v50 }
 0x284   : > { %v1132_v61 = vpop.f32.mrf.mxu0 }
 0x285   : > { %v1498_v0 = vmul.f32 -1.442695, %v2264_v59  ;;  %v2270_v1 = vadd.f32 %v1482_v50, %v1132_v61 }
 0x287   : > { %1854 = vpow2.f32 %v1498_v0  ;;  %v1497_v7 = vmul.f32 -1.442695, %v2270_v1 }
 0x288   : > { %1856 = vpow2.f32 %v1494_v60 }
 0x289   : > { %1858 = vpow2.f32 %v1497_v7 }
 0x28a   : > { %1860 = vpow2.f32 %v1493_v3 }
 0x28b   : > { %1862 = vpow2.f32 %v1492_v40 }
 0x28c   : > { %1864 = vpow2.f32 %v1491_v12  ;;  %v1851_v20 = vpop.eup %1850 }
 0x28d   : > { %1866 = vpow2.f32 %v1490_v14  ;;  %v1202_v26 = vadd.f32 1.0, %v1851_v20 }
 0x28e   : > { %v1853_v54 = vpop.eup %1852  ;;  %1868 = vpow2.f32 %v1489_v17 }
 0x28f   : > { %1870 = vpow2.f32 %v1486_v19  ;;  %v1201_v63 = vadd.f32 1.0, %v1853_v54 }
 0x290   : > { %1872 = vpow2.f32 %v1488_v11 }
 0x291   : > { %1874 = vpow2.f32 %v1487_v22 }
 0x294   : > { %v1855_v24 = vpop.eup %1854 }
 0x295   : > { %v1857_v27 = vpop.eup %1856  ;;  %v1204_v18 = vadd.f32 1.0, %v1855_v24 }
 0x296   : > { %v1859_v29 = vpop.eup %1858  ;;  %v1200_v34 = vadd.f32 1.0, %v1857_v27 }
 0x297   : > { %1876 = vrcp.f32 %v1204_v18  ;;  %v1203_v31 = vadd.f32 1.0, %v1859_v29  ;;  %v1861_v32 = vpop.eup %1860 }
 0x298   : > { %1878 = vrcp.f32 %v1202_v26  ;;  %v1863_v36 = vpop.eup %1862  ;;  %v1199_v23 = vadd.f32 1.0, %v1861_v32  ;;  %v1328_v32 = vld [vmem:[%s2040_s20] sm:$0xff] }
 0x299   : > { %1880 = vrcp.f32 %v1203_v31  ;;  %v1865_v38 = vpop.eup %1864  ;;  %v1198_v39 = vadd.f32 1.0, %v1863_v36 }
 0x29a   : > { %1882 = vpow2.f32 %v1485_v5  ;;  %v1867_v41 = vpop.eup %1866  ;;  %v1197_v42 = vadd.f32 1.0, %v1865_v38 }
 0x29b   : > { %1884 = vrcp.f32 %v1201_v63  ;;  %v1869_v43 = vpop.eup %1868  ;;  %v1196_v45 = vadd.f32 1.0, %v1867_v41 }
 0x29c   : > { %1886 = vpow2.f32 %v1484_v33  ;;  %v1871_v44 = vpop.eup %1870  ;;  %v1195_v47 = vadd.f32 1.0, %v1869_v43 }
 0x29d   : > { %1888 = vrcp.f32 %v1200_v34  ;;  %v1873_v46 = vpop.eup %1872  ;;  %v1192_v3 = vadd.f32 1.0, %v1871_v44 }
 0x29e   : > { %1890 = vpow2.f32 %v1483_v37  ;;  %v1875_v28 = vpop.eup %1874  ;;  %v1194_v50 = vadd.f32 1.0, %v1873_v46 }
 0x29f   : > { %1892 = vrcp.f32 %v1199_v23  ;;  %v1193_v57 = vadd.f32 1.0, %v1875_v28 }
 0x2a0   : > { %1894 = vrcp.f32 %v1198_v39 }
 0x2a1   : > { %1896 = vrcp.f32 %v1197_v42 }
 0x2a2   : > { %1898 = vrcp.f32 %v1196_v45 }
 0x2a3   : > { %1900 = vrcp.f32 %v1195_v47 }
 0x2a4   : > { %v1877_v48 = vpop.eup %1876  ;;  %1902 = vrcp.f32 %v1194_v50 }
 0x2a5   : > { %v1879_v25 = vpop.eup %1878  ;;  %v1252_v51 = vmul.f32 %v1877_v48, %v2264_v59  ;;  %1904 = vrcp.f32 %v1193_v57 }
 0x2a6   : > { %v1881_v55 = vpop.eup %1880  ;;  %v1250_v7 = vmul.f32 %v1879_v25, %v2254_v6  ;;  %1906 = vrcp.f32 %v1192_v3 }
 0x2a7   : > { %v1883_v56 = vpop.eup %1882  ;;  %v1251_v60 = vmul.f32 %v1881_v55, %v2270_v1  ;;  %1708 = vmatprep.subr.mxu1 %v1252_v51 }
 0x2a8   : > { %v1885_v61 = vpop.eup %1884  ;;  %1709 = vmatpush3.msra.mxu1 %v1252_v51  ;;  %v1191_v14 = vadd.f32 1.0, %v1883_v56 }
 0x2a9   : > { %v1887_v0 = vpop.eup %1886  ;;  %1710 = vmatprep.subr.mxu1 %v1251_v60  ;;  %v1249_v59 = vmul.f32 %v1885_v61, %v2256_v52 }
 0x2aa   : > { %v1889_v40 = vpop.eup %1888  ;;  %1711 = vmatpush3.msra.mxu1 %v1251_v60  ;;  %v1190_v1 = vadd.f32 1.0, %v1887_v0  ;;  %1908 = vrcp.f32 %v1191_v14 }
 0x2ab   : > { %v1891_v12 = vpop.eup %1890  ;;  %1712 = vmatprep.subr.mxu1 %v1250_v7  ;;  %v1248_v19 = vmul.f32 %v1889_v40, %v2258_v53 }
 0x2ac   : > { %v1893_v17 = vpop.eup %1892  ;;  %1713 = vmatpush3.msra.mxu1 %v1250_v7  ;;  %v1189_v11 = vadd.f32 1.0, %v1891_v12  ;;  %1910 = vrcp.f32 %v1190_v1 }
 0x2ad   : > { %1714 = vmatprep.subr.mxu1 %v1249_v59  ;;  %v1895_v20 = vpop.eup %1894  ;;  %v1247_v6 = vmul.f32 %v1893_v17, %v2262_v58 }
 0x2ae   : > { %1715 = vmatpush3.msra.mxu1 %v1249_v59  ;;  %v1897_v22 = vpop.eup %1896  ;;  %v1246_v52 = vmul.f32 %v1895_v20, %v2267_v62  ;;  %1912 = vrcp.f32 %v1189_v11 }
 0x2af   : > { %1716 = vmatprep.subr.mxu1 %v1248_v19  ;;  %v1899_v54 = vpop.eup %1898  ;;  %v1245_v24 = vmul.f32 %v1897_v22, %v2272_v2 }
 0x2b0   : > { %1717 = vmatpush3.msra.mxu1 %v1248_v19  ;;  %v1901_v53 = vpop.eup %1900  ;;  %v1244_v26 = vmul.f32 %v1899_v54, %v2276_v8 }
 0x2b1   : > { %1718 = vmatprep.subr.mxu1 %v1247_v6  ;;  %v1903_v27 = vpop.eup %1902  ;;  %v1243_v58 = vmul.f32 %v1901_v53, %v2279_v9 }
 0x2b2   : > { %1719 = vmatpush3.msra.mxu1 %v1247_v6  ;;  %v1905_v18 = vpop.eup %1904  ;;  %v1242_v62 = vmul.f32 %v1903_v27, %v2284_v13 }
 0x2b3   : > { %1720 = vmatprep.subr.mxu1 %v1246_v52  ;;  %v1907_v29 = vpop.eup %1906  ;;  %v1241_v2 = vmul.f32 %v1905_v18, %v2287_v16 }
 0x2b4   : > { %1721 = vmatpush3.msra.mxu1 %v1246_v52  ;;  %v1240_v8 = vmul.f32 %v1907_v29, %v2282_v35  ;;  %v1329_v35 = vld [vmem:[%s2040_s20 + $0x8] sm:$0xff] }
 0x2b5   : > { %1722 = vmatprep.subr.mxu1 %v1245_v24 }
 0x2b6   : > { %1723 = vmatpush3.msra.mxu1 %v1245_v24 }
 0x2b7   : > { %1724 = vmatprep.subr.mxu1 %v1244_v26  ;;  %v1909_v5 = vpop.eup %1908 }
 0x2b8   : > { %1725 = vmatpush3.msra.mxu1 %v1244_v26  ;;  %v1239_v9 = vmul.f32 %v1909_v5, %v2292_v21 }
 0x2b9   : > { %1726 = vmatprep.subr.mxu1 %v1243_v58  ;;  %v1911_v63 = vpop.eup %1910 }
 0x2ba   : > { %1727 = vmatpush3.msra.mxu1 %v1243_v58  ;;  %v1238_v13 = vmul.f32 %v1911_v63, %v2295_v49 }
 0x2bb   : > { %1728 = vmatprep.subr.mxu1 %v1242_v62  ;;  %v1913_v31 = vpop.eup %1912 }
 0x2bc   : > { %1729 = vmatpush3.msra.mxu1 %v1242_v62  ;;  %v1237_v16 = vmul.f32 %v1913_v31, %v2298_v30 }
 0x2bd   : > { %1730 = vmatprep.subr.mxu1 %v1241_v2 }
 0x2be   : > { %1731 = vmatpush3.msra.mxu1 %v1241_v2 }
 0x2bf   : > { %1732 = vmatprep.subr.mxu1 %v1240_v8 }
 0x2c0   : > { %1733 = vmatpush3.msra.mxu1 %v1240_v8 }
 0x2c1   : > { %1734 = vmatprep.subr.mxu1 %v1239_v9 }
 0x2c2   : > { %1735 = vmatpush3.msra.mxu1 %v1239_v9 }
 0x2c3   : > { %1736 = vmatprep.subr.mxu1 %v1238_v13 }
 0x2c4   : > { %1737 = vmatpush3.msra.mxu1 %v1238_v13 }
 0x2c5   : > { %1738 = vmatprep.subr.mxu1 %v1237_v16 }
 0x2c6   : > { %1739 = vmatpush3.msra.mxu1 %v1237_v16 }
 0x2c7   : > { %1741 = vmatmul.mubr.msk.f32.vlgmr.msra.gmra.mxu1 %vm348_vm3, %v1956_v15 }
 0x387   : > { %v1742_v21 = vpop.f32.mrf.mxu1 }
 0x388   : > { %v1331_v33 = vadd.f32 %v1742_v21, %v1329_v35 }
 0x389   : > { %v1319_v34 = vpop.f32.mrf.mxu1 }
 0x38a   : > { %1333 = vst [vmem:[%s2040_s20 + $0x8] sm:$0xff] %v1331_v33  ;;  %v1330_v49 = vadd.f32 %v1328_v32, %v1319_v34 }
 0x38c   : > { %1332 = vst [vmem:[%s2040_s20] sm:$0xff] %v1330_v49 }
 0x38d PF: > { %s17_s28 = sadd.s32 1, %s1952_s28   ;;  %s2350_s24 = smov %s1944_s26 }
 0x38e   : > { %p14_p8 = scmp.ge.s32.totalorder %s17_s28, 6   ;;  %s2351_s25 = smov %s1948_s27 }
 0x38f   : > { %s2352_s26 = smov %s2355_s29  ;;  %s2353_s27 = smov %s2359_s30 }
 0x390   :  { %16 = sbr.rel (!%p14_p8) target bundleno = 3 (0x3), region = 85 }

// kernel: egcl_encode_forward.3
= control target key start
LH: loop header
LB: loop body
LE: loop exit
PB: predicated region body
PF: predicated region fallthrough
CT: control target
= control target key end

     0   :  { %s776_s0 = inlined_call_operand.vmem [shape: f32[16,128], index: 0, kind: input, shape index: {}]   ;;  %s777_s1 = inlined_call_operand.vmem [shape: f32[2,16,128], index: 1, kind: input, shape index: {}]   ;;  %s778_s2 = inlined_call_operand.vmem [shape: f32[128,128], index: 2, kind: input, shape index: {}]   ;;  %s779_s3 = inlined_call_operand.vmem [shape: f32[128,128], index: 3, kind: input, shape index: {}]   ;;  %s780_s4 = inlined_call_operand.vmem [shape: f32[1,128], index: 4, kind: input, shape index: {}]   ;;  %s781_s5 = inlined_call_operand.vmem [shape: f32[128,128], index: 5, kind: input, shape index: {}]   ;;  %s782_s6 = inlined_call_operand.vmem [shape: f32[1,128], index: 6, kind: input, shape index: {}]   ;;  %s783_s7 = inlined_call_operand.hbm [shape: f32[16,128], index: 7, kind: output, shape index: {}]  }
   0x1   :  { %v66_v0 = vld [vmem:[%s779_s3 + $0x78] sm:$0xff]  ;;  %v65_v2 = vld [vmem:[%s779_s3 + $0x70] sm:$0xff]  ;;  %v64_v4 = vld [vmem:[%s779_s3 + $0x68] sm:$0xff] }
   0x2   :  { %v50_v1 = vld [vmem:[%s778_s2 + $0x78] sm:$0xff]  ;;  %416 = vmatprep.subr.mxu0 %v66_v0  ;;  %v49_v3 = vld [vmem:[%s778_s2 + $0x70] sm:$0xff]  ;;  %v48_v5 = vld [vmem:[%s778_s2 + $0x68] sm:$0xff] }
   0x3   :  { %451 = vmatprep.subr.mxu1 %v50_v1  ;;  %417 = vmatpush3.msra.mxu0 %v66_v0  ;;  %v63_v6 = vld [vmem:[%s779_s3 + $0x60] sm:$0xff]  ;;  %v62_v8 = vld [vmem:[%s779_s3 + $0x58] sm:$0xff]  ;;  %v61_v10 = vld [vmem:[%s779_s3 + $0x50] sm:$0xff] }
   0x4   :  { %452 = vmatpush3.msra.mxu1 %v50_v1  ;;  %418 = vmatprep.subr.mxu0 %v65_v2  ;;  %v47_v7 = vld [vmem:[%s778_s2 + $0x60] sm:$0xff]  ;;  %v46_v9 = vld [vmem:[%s778_s2 + $0x58] sm:$0xff]  ;;  %v45_v11 = vld [vmem:[%s778_s2 + $0x50] sm:$0xff] }
   0x5   :  { %453 = vmatprep.subr.mxu1 %v49_v3  ;;  %419 = vmatpush3.msra.mxu0 %v65_v2  ;;  %v60_v12 = vld [vmem:[%s779_s3 + $0x48] sm:$0xff]  ;;  %v59_v14 = vld [vmem:[%s779_s3 + $0x40] sm:$0xff] }
   0x6   :  { %454 = vmatpush3.msra.mxu1 %v49_v3  ;;  %420 = vmatprep.subr.mxu0 %v64_v4  ;;  %v44_v13 = vld [vmem:[%s778_s2 + $0x48] sm:$0xff]  ;;  %v43_v15 = vld [vmem:[%s778_s2 + $0x40] sm:$0xff] }
   0x7   :  { %455 = vmatprep.subr.mxu1 %v48_v5  ;;  %421 = vmatpush3.msra.mxu0 %v64_v4 }
   0x8   :  { %456 = vmatpush3.msra.mxu1 %v48_v5  ;;  %422 = vmatprep.subr.mxu0 %v63_v6 }
   0x9   :  { %457 = vmatprep.subr.mxu1 %v47_v7  ;;  %423 = vmatpush3.msra.mxu0 %v63_v6 }
   0xa   :  { %458 = vmatpush3.msra.mxu1 %v47_v7  ;;  %424 = vmatprep.subr.mxu0 %v62_v8 }
   0xb   :  { %459 = vmatprep.subr.mxu1 %v46_v9  ;;  %425 = vmatpush3.msra.mxu0 %v62_v8 }
   0xc   :  { %460 = vmatpush3.msra.mxu1 %v46_v9  ;;  %426 = vmatprep.subr.mxu0 %v61_v10 }
   0xd   :  { %461 = vmatprep.subr.mxu1 %v45_v11  ;;  %427 = vmatpush3.msra.mxu0 %v61_v10 }
   0xe   :  { %462 = vmatpush3.msra.mxu1 %v45_v11 }
   0xf   :  { %12 = vsyncpa [#allocation3], 0  ;;  %428 = vmatprep.subr.mxu0 %v60_v12  ;;  %463 = vmatprep.subr.mxu1 %v44_v13  ;;  %v58_v16 = vld [vmem:[%s779_s3 + $0x38] sm:$0xff]  ;;  %v57_v18 = vld [vmem:[%s779_s3 + $0x30] sm:$0xff]  ;;  %s554_s11 = smov [#allocation2]  }
  0x10   :  { %429 = vmatpush3.msra.mxu0 %v60_v12  ;;  %464 = vmatpush3.msra.mxu1 %v44_v13  ;;  %v42_v17 = vld [vmem:[%s778_s2 + $0x38] sm:$0xff]  ;;  %v41_v19 = vld [vmem:[%s778_s2 + $0x30] sm:$0xff]  ;;  %v56_v20 = vld [vmem:[%s779_s3 + $0x28] sm:$0xff]  ;;  %s347_s12 = sshll.u32 %s554_s11, 4  ;;  %s348_s12 = int_to_ptr.vmem [resolvable:$true] %s347_s12 }
  0x11   :  { %430 = vmatprep.subr.mxu0 %v59_v14  ;;  %465 = vmatprep.subr.mxu1 %v43_v15  ;;  %v40_v21 = vld [vmem:[%s778_s2 + $0x28] sm:$0xff]  ;;  %v55_v22 = vld [vmem:[%s779_s3 + $0x20] sm:$0xff]  ;;  %v54_v24 = vld [vmem:[%s779_s3 + $0x18] sm:$0xff]  ;;  %s532_s13 = scalar_lea.vmem %s348_s12, 256  ;;  %p537_p1 = scmp.lt.s32.totalorder %s348_s12, %s348_s12 }
  0x12   :  { %431 = vmatpush3.msra.mxu0 %v59_v14  ;;  %466 = vmatpush3.msra.mxu1 %v43_v15  ;;  %v39_v23 = vld [vmem:[%s778_s2 + $0x20] sm:$0xff]  ;;  %v38_v25 = vld [vmem:[%s778_s2 + $0x18] sm:$0xff]  ;;  %v53_v26 = vld [vmem:[%s779_s3 + $0x10] sm:$0xff]  ;;  %p533_p0 = scmp.ne.s32.totalorder %s348_s12, %s532_s13  ;;  %p538_p2 = scmp.lt.s32.totalorder %s532_s13, %s532_s13 }
  0x13   :  { %432 = vmatprep.subr.mxu0 %v58_v16  ;;  %467 = vmatprep.subr.mxu1 %v42_v17  ;;  %v37_v27 = vld [vmem:[%s778_s2 + $0x10] sm:$0xff]  ;;  %v27_v28 = vld [vmem:[%s777_s1] sm:$0xff]  ;;  %v52_v30 = vld [vmem:[%s779_s3 + $0x8] sm:$0xff] }
  0x14   :  { %433 = vmatpush3.msra.mxu0 %v58_v16  ;;  %468 = vmatpush3.msra.mxu1 %v42_v17  ;;  %v29_v29 = vld [vmem:[%s777_s1 + $0x10] sm:$0xff]  ;;  %v36_v31 = vld [vmem:[%s778_s2 + $0x8] sm:$0xff]  ;;  %v30_v33 = vld [vmem:[%s777_s1 + $0x18] sm:$0xff]  ;;  %p539_p3 = por %p538_p2, %p537_p1 }
  0x15   :  { %434 = vmatprep.subr.mxu0 %v57_v18  ;;  %469 = vmatprep.subr.mxu1 %v41_v19  ;;  %v28_v32 = vld [vmem:[%s777_s1 + $0x8] sm:$0xff]  ;;  %v51_v34 = vld [vmem:[%s779_s3] sm:$0xff]  ;;  %v31_v36 = vadd.f32 %v29_v29, %v27_v28  ;;  %v255_v40 = vld [vmem:[%s781_s5 + $0x78] sm:$0xff] }
  0x16   :  { %435 = vmatpush3.msra.mxu0 %v57_v18  ;;  %470 = vmatpush3.msra.mxu1 %v41_v19  ;;  %v35_v35 = vld [vmem:[%s778_s2] sm:$0xff]  ;;  %v32_v38 = vadd.f32 %v30_v33, %v28_v32  ;;  %v713_v39 = vld [vmem:[%s776_s0 + $0x8] sm:$0xff]  ;;  %v254_v41 = vld [vmem:[%s781_s5 + $0x70] sm:$0xff]  ;;  %p540_p4 = pnand %p539_p3, %p533_p0 }
  0x17   :  { %436 = vmatprep.subr.mxu0 %v56_v20  ;;  %471 = vmatprep.subr.mxu1 %v40_v21  ;;  %v708_v37 = vld [vmem:[%s776_s0] sm:$0xff]  ;;  %v253_v42 = vld [vmem:[%s781_s5 + $0x68] sm:$0xff]  ;;  %v251_v44 = vld [vmem:[%s781_s5 + $0x58] sm:$0xff] }
  0x18   :  { %437 = vmatpush3.msra.mxu0 %v56_v20  ;;  %472 = vmatpush3.msra.mxu1 %v40_v21  ;;  %v252_v43 = vld [vmem:[%s781_s5 + $0x60] sm:$0xff]  ;;  %v250_v45 = vld [vmem:[%s781_s5 + $0x50] sm:$0xff]  ;;  %v249_v46 = vld [vmem:[%s781_s5 + $0x48] sm:$0xff] }
  0x19   :  { %438 = vmatprep.subr.mxu0 %v55_v22  ;;  %473 = vmatprep.subr.mxu1 %v39_v23  ;;  %v248_v47 = vld [vmem:[%s781_s5 + $0x40] sm:$0xff]  ;;  %v247_v48 = vld [vmem:[%s781_s5 + $0x38] sm:$0xff]  ;;  %v246_v49 = vld [vmem:[%s781_s5 + $0x30] sm:$0xff] }
  0x1a   :  { %439 = vmatpush3.msra.mxu0 %v55_v22  ;;  %474 = vmatpush3.msra.mxu1 %v39_v23  ;;  %v245_v50 = vld [vmem:[%s781_s5 + $0x28] sm:$0xff]  ;;  %v244_v51 = vld [vmem:[%s781_s5 + $0x20] sm:$0xff]  ;;  %v243_v52 = vld [vmem:[%s781_s5 + $0x18] sm:$0xff] }
  0x1b   :  { %440 = vmatprep.subr.mxu0 %v54_v24  ;;  %475 = vmatprep.subr.mxu1 %v38_v25  ;;  %v242_v53 = vld [vmem:[%s781_s5 + $0x10] sm:$0xff]  ;;  %v241_v54 = vld [vmem:[%s781_s5 + $0x8] sm:$0xff]  ;;  %v240_v55 = vld [vmem:[%s781_s5] sm:$0xff] }
  0x1c   :  { %441 = vmatpush3.msra.mxu0 %v54_v24  ;;  %476 = vmatpush3.msra.mxu1 %v38_v25  ;;  %v358_v58 = vld [vmem:[%s780_s4] ss:$0 sm:$0xff] }
  0x1d   :  { %442 = vmatprep.subr.mxu0 %v53_v26  ;;  %477 = vmatprep.subr.mxu1 %v37_v27  ;;  %v361_v11 = vld [vmem:[%s782_s6] ss:$0 sm:$0xff] }
  0x1e   :  { %443 = vmatpush3.msra.mxu0 %v53_v26  ;;  %478 = vmatpush3.msra.mxu1 %v37_v27 }
  0x1f   :  { %444 = vmatprep.subr.mxu0 %v52_v30  ;;  %479 = vmatprep.subr.mxu1 %v36_v31 }
  0x20   :  { %445 = vmatpush3.msra.mxu0 %v52_v30  ;;  %480 = vmatpush3.msra.mxu1 %v36_v31 }
  0x21   :  { %446 = vmatprep.subr.mxu0 %v51_v34  ;;  %481 = vmatprep.subr.mxu1 %v35_v35 }
  0x22   :  { %447 = vmatpush3.msra.mxu0 %v51_v34  ;;  %448 = vmatprep.mubr.f32.mxu0 %v31_v36 }
  0x23   :  { %482 = vmatpush3.msra.mxu1 %v35_v35  ;;  %483 = vmatprep.mubr.f32.mxu1 %v708_v37 }
  0x24   :  { %449 = vmatmul.mubr.f32.vlgmr.msra.gmra.mxu0 %v32_v38  ;;  %484 = vmatmul.mubr.f32.vlgmr.msra.gmra.mxu1 %v713_v39 }
  0x25   :  { %486 = vmatprep.subr.mxu0 %v255_v40 }
  0x26   :  { %487 = vmatpush3.msra.mxu0 %v255_v40 }
  0x27   :  { %488 = vmatprep.subr.mxu0 %v254_v41 }
  0x28   :  { %489 = vmatpush3.msra.mxu0 %v254_v41 }
  0x29   :  { %490 = vmatprep.subr.mxu0 %v253_v42 }
  0x2a   :  { %491 = vmatpush3.msra.mxu0 %v253_v42 }
  0x2b   :  { %492 = vmatprep.subr.mxu0 %v252_v43 }
  0x2c   :  { %493 = vmatpush3.msra.mxu0 %v252_v43 }
  0x2d   :  { %494 = vmatprep.subr.mxu0 %v251_v44 }
  0x2e   :  { %495 = vmatpush3.msra.mxu0 %v251_v44 }
  0x2f   :  { %496 = vmatprep.subr.mxu0 %v250_v45 }
  0x30   :  { %497 = vmatpush3.msra.mxu0 %v250_v45 }
  0x31   :  { %498 = vmatprep.subr.mxu0 %v249_v46 }
  0x32   :  { %499 = vmatpush3.msra.mxu0 %v249_v46 }
  0x33   :  { %500 = vmatprep.subr.mxu0 %v248_v47 }
  0x34   :  { %501 = vmatpush3.msra.mxu0 %v248_v47 }
  0x35   :  { %502 = vmatprep.subr.mxu0 %v247_v48 }
  0x36   :  { %503 = vmatpush3.msra.mxu0 %v247_v48 }
  0x37   :  { %504 = vmatprep.subr.mxu0 %v246_v49 }
  0x38   :  { %505 = vmatpush3.msra.mxu0 %v246_v49 }
  0x39   :  { %506 = vmatprep.subr.mxu0 %v245_v50 }
  0x3a   :  { %507 = vmatpush3.msra.mxu0 %v245_v50 }
  0x3b   :  { %508 = vmatprep.subr.mxu0 %v244_v51 }
  0x3c   :  { %509 = vmatpush3.msra.mxu0 %v244_v51 }
  0x3d   :  { %510 = vmatprep.subr.mxu0 %v243_v52 }
  0x3e   :  { %511 = vmatpush3.msra.mxu0 %v243_v52 }
  0x3f   :  { %512 = vmatprep.subr.mxu0 %v242_v53 }
  0x40   :  { %513 = vmatpush3.msra.mxu0 %v242_v53 }
  0x41   :  { %514 = vmatprep.subr.mxu0 %v241_v54 }
  0x42   :  { %515 = vmatpush3.msra.mxu0 %v241_v54 }
  0x43   :  { %516 = vmatprep.subr.mxu0 %v240_v55 }
  0x44   :  { %517 = vmatpush3.msra.mxu0 %v240_v55 }
  0xe4   :  { %v450_v56 = vpop.f32.mrf.mxu0  ;;  %v485_v57 = vpop.f32.mrf.mxu1 }
  0xe5   :  { %v214_v59 = vadd.f32 %v485_v57, %v450_v56 }
  0xe6   :  { %v133_v60 = vpop.f32.mrf.mxu0  ;;  %v208_v61 = vpop.f32.mrf.mxu1 }
  0xe7   :  { %v225_v62 = vadd.f32 %v358_v58, %v214_v59  ;;  %v209_v63 = vadd.f32 %v208_v61, %v133_v60 }
  0xe9   :  { %v360_v0 = vmul.f32 -1.442695, %v225_v62  ;;  %v224_v1 = vadd.f32 %v358_v58, %v209_v63 }
  0xeb   :  { %524 = vpow2.f32 %v360_v0  ;;  %v359_v2 = vmul.f32 -1.442695, %v224_v1 }
  0xed   :  { %526 = vpow2.f32 %v359_v2 }
  0xf8   :  { %v525_v3 = vpop.eup %524 }
  0xf9   :  { %v233_v4 = vadd.f32 1.0, %v525_v3 }
  0xfa   :  { %v527_v5 = vpop.eup %526 }
  0xfb   :  { %v232_v6 = vadd.f32 1.0, %v527_v5  ;;  %528 = vrcp.f32 %v233_v4 }
  0xfd   :  { %530 = vrcp.f32 %v232_v6 }
 0x108   :  { %v529_v7 = vpop.eup %528 }
 0x109   :  { %v239_v10 = vmul.f32 %v529_v7, %v225_v62 }
 0x10a   :  { %v531_v8 = vpop.eup %530 }
 0x10b   :  { %v238_v9 = vmul.f32 %v531_v8, %v224_v1 }
 0x10d   :  { %518 = vmatprep.mubr.f32.mxu0 %v238_v9 }
 0x10e   :  { %519 = vmatmul.mubr.f32.vlgmr.msra.gmra.mxu0 %v239_v10 }
 0x1ce   :  { %v520_v12 = vpop.f32.mrf.mxu0 }
 0x1cf   :  { %v335_v13 = vadd.f32 %v520_v12, %v361_v11 }
 0x1d0   :  { %v329_v14 = vpop.f32.mrf.mxu0 }
 0x1d1   :  { %v339_v15 = vadd.f32 %v335_v13, %v713_v39  ;;  %v330_v16 = vadd.f32 %v361_v11, %v329_v14 }
 0x1d3   :  { %341 = vst [vmem:[#allocation2 + $0x8] sm:$0xff] %v339_v15  ;;  %v338_v17 = vadd.f32 %v330_v16, %v708_v37 }
 0x1d5   :  { %340 = vst [vmem:[#allocation2] sm:$0xff] %v338_v17 }
 0x1d6   :  { %543 = shalt.err (!%p540_p4)
}
 0x1d7   :  { %s555_s6 = smov 128   ;;  %s556_s14 = smov 8  }
 0x1d8   :  { %353 = dma.vmem_to_hbm [thread:$0]  %s348_s12, 256, %s783_s7, [#allocation3], %s555_s6, %s555_s6, %s556_s14  }
 0x1d9   :  { %552 = dma.done.wait [#allocation3], 256  }
 0x1da   :  { %553 = vsyncadd [#allocation3], 4294967040 }
 0x1db   :  { %357 = vsyncpa [#allocation3], 1 }

</bundles_post_ra>
